<compile_context>
chip_gen: v5e
topology: v5e:2x2
jax: 0.10.0
libtpu: 0.0.40
codegen_flags: <defaults>
</compile_context>

<pallas_src>
import jax
import jax.numpy as jnp
from jax import lax
from jax.experimental import pallas as pl
from jax.experimental.pallas import tpu as pltpu

NEG_SLOPE = 0.05
EPS = 1e-5
K = 3  # kernel_size


def _leaky(x):
    return jnp.where(x > 0, x, NEG_SLOPE * x)


def basic_block_forward(x_nchw, params):
    """Forward pass of BasicBlock. x_nchw: (N, Cin, H, W) f32 -> (N, Cout, H-4, W-4)."""
    w1, g1, b1, w2, g2, b2 = params            # w1: (K,K,Cin,Cmid) HWIO, w2: (K,K,Cmid,Cout)
    N, Cin, H, W = x_nchw.shape
    Cmid, Cout = w1.shape[-1], w2.shape[-1]
    assert Cin == Cout, "residual add requires input_channel == output_channel"
    assert K == 3, "mask/residual-offset invariants assume K == 3, stride 1, valid padding"
    H1, W1 = H - (K - 1), W - (K - 1)          # after conv1
    H2, W2 = H1 - (K - 1), W1 - (K - 1)        # after conv2
    P = H * W
    NP = N * P                                  # flat (batch-folded) spatial length, lane axis
    cnt1 = float(N * H1 * W1)
    cnt2 = float(N * H2 * W2)
    res_off = (K - 1) * W + (K - 1)             # residual tap offset (2, 2)

    # Pad input channels to a full sublane group so the tap stack is tile-aligned.
    Cpad = ((Cin + 7) // 8) * 8
    x_p = jnp.pad(x_nchw.astype(jnp.float32), ((0, 0), (0, Cpad - Cin), (0, 0), (0, 0)))
    x_cf = jnp.transpose(x_p, (1, 0, 2, 3)).reshape(Cpad, NP)              # (Cpad, N*P) f32

    # Lane-dense weights; bf16 MXU operands (f32 accumulation in the kernel).
    w1p = jnp.pad(w1, ((0, 0), (0, 0), (0, Cpad - Cin), (0, 0)))
    w1k = jnp.transpose(w1p, (3, 0, 1, 2)).reshape(Cmid, K * K * Cpad).astype(jnp.bfloat16)
    w2k = jnp.transpose(w2, (0, 1, 3, 2)).reshape(K * K, Cout, Cmid).astype(jnp.bfloat16)
    g1k = g1.reshape(Cmid, 1).astype(jnp.float32)
    b1k = b1.reshape(Cmid, 1).astype(jnp.float32)
    g2k = g2.reshape(Cout, 1).astype(jnp.float32)
    b2k = b2.reshape(Cout, 1).astype(jnp.float32)

    # Valid-position mask columns (col 0: BN1 stats, col 1: BN2 stats) -> BN sums run on MXU.
    g = jnp.arange(NP, dtype=jnp.int32)
    row = (g // W) % H
    col = g % W
    m1 = ((row < H1) & (col < W1)).astype(jnp.float32)
    m2 = ((row < H2) & (col < W2)).astype(jnp.float32)
    mask_cols = jnp.stack([m1, m2], axis=1)                                 # (N*P, 2) f32

    def kernel(x_ref, w1_ref, w2_ref, g1_ref, b1_ref, g2_ref, b2_ref, m_ref, o_ref):
        mc = m_ref[...]                                   # (NP, 2) f32 mask columns
        xv = x_ref[...]                                   # (Cpad, NP) f32

        def shift(v, off):
            # shift(v, off)[:, p] == v[:, p + off]; wrap / cross-image bleed only ever lands
            # on masked (mc == 0) or sliced-away output positions for K=3 valid convs.
            return v if off == 0 else pltpu.roll(v, shift=NP - off, axis=1)

        # ---- conv1: stack the 9 rolled strips -> ONE (Cmid, 9*Cpad)@(9*Cpad, NP) matmul ----
        strips = []
        res = None
        for dy in range(K):
            for dx in range(K):
                off = dy * W + dx
                s = shift(xv, off)
                if off == res_off:
                    res = s                               # residual crop inputs[:,:,2:H2+2,2:W2+2] (f32)
                strips.append(s)
        stack = jnp.concatenate(strips, axis=0).astype(jnp.bfloat16)   # (K*K*Cpad, NP)
        h1 = jnp.dot(w1_ref[...], stack, preferred_element_type=jnp.float32)   # (Cmid, NP) f32

        # ---- BN1 (training-mode batch stats); masked sums via MXU mask-column matmuls ----
        s1 = jnp.dot(h1, mc, preferred_element_type=jnp.float32)[:, 0:1]        # (Cmid, 1)
        ss1 = jnp.dot(h1 * h1, mc, preferred_element_type=jnp.float32)[:, 0:1]
        mean1 = s1 * (1.0 / cnt1)
        var1 = ss1 * (1.0 / cnt1) - mean1 * mean1          # biased batch variance
        sc1 = g1_ref[...] * lax.rsqrt(var1 + EPS)
        sh1 = b1_ref[...] - mean1 * sc1

        # ---- conv2: 9 (Cout,Cmid)@(Cmid,NP) matmuls, roll the small OUTPUT per tap ----
        h1b = _leaky(h1 * sc1 + sh1).astype(jnp.bfloat16)  # BN1 + LeakyReLU fused, bf16 operand
        acc2 = jnp.zeros((Cout, NP), jnp.float32)
        for dy in range(K):
            for dx in range(K):
                off = dy * W + dx
                y = jnp.dot(w2_ref[dy * K + dx], h1b, preferred_element_type=jnp.float32)
                acc2 = acc2 + shift(y, off)

        # ---- BN2 stats (same MXU mask-column trick, column 1) ----
        s2 = jnp.dot(acc2, mc, preferred_element_type=jnp.float32)[:, 1:2]
        ss2 = jnp.dot(acc2 * acc2, mc, preferred_element_type=jnp.float32)[:, 1:2]
        mean2 = s2 * (1.0 / cnt2)
        var2 = ss2 * (1.0 / cnt2) - mean2 * mean2
        sc2 = g2_ref[...] * lax.rsqrt(var2 + EPS)
        sh2 = b2_ref[...] - mean2 * sc2

        # ---- BN2 + residual + LeakyReLU, full-width lane-dense store ----
        o_ref[...] = _leaky(acc2 * sc2 + sh2 + res[0:Cout, :])

    conv_flops = 2 * NP * K * K * (Cpad * Cmid + Cmid * Cout)
    stat_flops = 2 * NP * 2 * 2 * (Cmid + Cout)
    io_bytes = (x_cf.size * 4 + w1k.size * 2 + w2k.size * 2
                + 4 * (g1k.size + b1k.size + g2k.size + b2k.size)
                + mask_cols.size * 4 + Cout * NP * 4)

    out_flat = pl.pallas_call(
        kernel,
        out_shape=jax.ShapeDtypeStruct((Cout, NP), jnp.float32),
        in_specs=[pl.BlockSpec(memory_space=pltpu.MemorySpace.VMEM)] * 8,
        out_specs=pl.BlockSpec(memory_space=pltpu.MemorySpace.VMEM),
        compiler_params=pltpu.CompilerParams(vmem_limit_bytes=32 * 1024 * 1024),
        cost_estimate=pl.CostEstimate(flops=conv_flops + stat_flops,
                                      transcendentals=Cmid + Cout,
                                      bytes_accessed=io_bytes),
    )(x_cf, w1k, w2k, g1k, b1k, g2k, b2k, mask_cols)

    # (Cout, N*H*W) -> NCHW, then drop the padded (invalid) border columns/rows.
    out = out_flat.reshape(Cout, N, H, W).transpose(1, 0, 2, 3)
    return out[:, :, :H2, :W2]


def reference_forward(x_nchw, params):
    """Pure-JAX reference matching the PyTorch BasicBlock.forward (training-mode BN)."""
    w1, g1, b1, w2, g2, b2 = params
    x = jnp.transpose(x_nchw, (0, 2, 3, 1))

    def conv(a, w):
        return lax.conv_general_dilated(
            a, w, (1, 1), "VALID",
            dimension_numbers=("NHWC", "HWIO", "NHWC"))

    def bn(a, g, b):
        m = jnp.mean(a, axis=(0, 1, 2))
        v = jnp.mean((a - m) ** 2, axis=(0, 1, 2))
        return (a - m) * (g.reshape(-1) * lax.rsqrt(v + EPS)) + b.reshape(-1)

    h = _leaky(bn(conv(x, w1), g1, b1))
    h = bn(conv(h, w2), g2, b2)
    H2, W2 = h.shape[1], h.shape[2]
    h = _leaky(h + x[:, 2:2 + H2, 2:2 + W2, :])
    return jnp.transpose(h, (0, 3, 1, 2))


if __name__ == "__main__":
    key = jax.random.PRNGKey(0)
    kx, k1, k2, kg1, kb1, kg2, kb2 = jax.random.split(key, 7)

    # input_channel = output_channel = 4 (residual add requires them equal), middle = 64
    N, Cin, H, W = 2, 4, 16, 16
    Cmid, Cout = 64, 4

    x = jax.random.normal(kx, (N, Cin, H, W), dtype=jnp.float32)
    # conv weights in HWIO layout; BN affine params deterministically initialized
    w1 = 0.1 * jax.random.normal(k1, (K, K, Cin, Cmid), dtype=jnp.float32)
    w2 = 0.1 * jax.random.normal(k2, (K, K, Cmid, Cout), dtype=jnp.float32)
    g1 = 1.0 + 0.1 * jax.random.normal(kg1, (Cmid,), dtype=jnp.float32)
    b1 = 0.1 * jax.random.normal(kb1, (Cmid,), dtype=jnp.float32)
    g2 = 1.0 + 0.1 * jax.random.normal(kg2, (Cout,), dtype=jnp.float32)
    b2 = 0.1 * jax.random.normal(kb2, (Cout,), dtype=jnp.float32)
    params = (w1, g1, b1, w2, g2, b2)

    out = jax.block_until_ready(basic_block_forward(x, params))
    assert out.shape == (N, Cout, H - 4, W - 4), out.shape

    ref = jax.block_until_ready(reference_forward(x, params))
    # bf16 MXU operands in the kernel vs an all-f32 XLA reference -> 2e-2 tolerance.
    if not jnp.allclose(out, ref, rtol=2e-2, atol=2e-2):
        max_err = jnp.max(jnp.abs(out - ref))
        raise AssertionError(f"mismatch vs reference, max abs err = {max_err}")

    print("KERNEL_OK")
</pallas_src>

<mosaic_0001>
module attributes {stable_mosaic.version = 11 : i64} {
  func.func @kernel(%arg0: memref<8x512xf32, #tpu.memory_space<vmem>>, %arg1: memref<64x72xbf16, #tpu.memory_space<vmem>>, %arg2: memref<9x4x64xbf16, #tpu.memory_space<vmem>>, %arg3: memref<64x1xf32, #tpu.memory_space<vmem>>, %arg4: memref<64x1xf32, #tpu.memory_space<vmem>>, %arg5: memref<4x1xf32, #tpu.memory_space<vmem>>, %arg6: memref<4x1xf32, #tpu.memory_space<vmem>>, %arg7: memref<512x2xf32, #tpu.memory_space<vmem>>, %arg8: memref<4x512xf32, #tpu.memory_space<vmem>>) attributes {dimension_semantics = [], scalar_prefetch = 0 : i64, scratch_operands = 0 : i64, tpu.core_type = #tpu.core_type<tc>} {
    %c0 = arith.constant 0 : index
    %c0_0 = arith.constant 0 : index
    %0 = vector.load %arg7[%c0, %c0_0] : memref<512x2xf32, #tpu.memory_space<vmem>>, vector<512x2xf32>
    %c0_1 = arith.constant 0 : index
    %c0_2 = arith.constant 0 : index
    %1 = vector.load %arg0[%c0_1, %c0_2] : memref<8x512xf32, #tpu.memory_space<vmem>>, vector<8x512xf32>
    %c511_i32 = arith.constant 511 : i32
    %2 = tpu.dynamic_rotate %1 by %c511_i32 dim 1 : vector<8x512xf32>, i32 -> vector<8x512xf32>
    %c510_i32 = arith.constant 510 : i32
    %3 = tpu.dynamic_rotate %1 by %c510_i32 dim 1 : vector<8x512xf32>, i32 -> vector<8x512xf32>
    %c496_i32 = arith.constant 496 : i32
    %4 = tpu.dynamic_rotate %1 by %c496_i32 dim 1 : vector<8x512xf32>, i32 -> vector<8x512xf32>
    %c495_i32 = arith.constant 495 : i32
    %5 = tpu.dynamic_rotate %1 by %c495_i32 dim 1 : vector<8x512xf32>, i32 -> vector<8x512xf32>
    %c494_i32 = arith.constant 494 : i32
    %6 = tpu.dynamic_rotate %1 by %c494_i32 dim 1 : vector<8x512xf32>, i32 -> vector<8x512xf32>
    %c480_i32 = arith.constant 480 : i32
    %7 = tpu.dynamic_rotate %1 by %c480_i32 dim 1 : vector<8x512xf32>, i32 -> vector<8x512xf32>
    %c479_i32 = arith.constant 479 : i32
    %8 = tpu.dynamic_rotate %1 by %c479_i32 dim 1 : vector<8x512xf32>, i32 -> vector<8x512xf32>
    %c478_i32 = arith.constant 478 : i32
    %9 = tpu.dynamic_rotate %1 by %c478_i32 dim 1 : vector<8x512xf32>, i32 -> vector<8x512xf32>
    %10 = tpu.concatenate %1, %2, %3, %4, %5, %6, %7, %8, %9 in 0 : vector<8x512xf32>, vector<8x512xf32>, vector<8x512xf32>, vector<8x512xf32>, vector<8x512xf32>, vector<8x512xf32>, vector<8x512xf32>, vector<8x512xf32>, vector<8x512xf32> -> vector<72x512xf32>
    %11 = arith.truncf %10 : vector<72x512xf32> to vector<72x512xbf16>
    %c0_3 = arith.constant 0 : index
    %c0_4 = arith.constant 0 : index
    %12 = vector.load %arg1[%c0_3, %c0_4] : memref<64x72xbf16, #tpu.memory_space<vmem>>, vector<64x72xbf16>
    %cst = arith.constant dense<0.000000e+00> : vector<64x512xf32>
    %13 = tpu.matmul %12, %11, %cst {dimension_numbers = #tpu.dot_dimension_numbers<[1], [0], [0], [1], [0, 0, 1, 1], [], []>} : vector<64x72xbf16>, vector<72x512xbf16>, vector<64x512xf32> -> vector<64x512xf32>
    %cst_5 = arith.constant dense<0.000000e+00> : vector<64x2xf32>
    %14 = tpu.matmul %13, %0, %cst_5 {dimension_numbers = #tpu.dot_dimension_numbers<[1], [0], [0], [1], [0, 0, 1, 1], [], []>} : vector<64x512xf32>, vector<512x2xf32>, vector<64x2xf32> -> vector<64x2xf32>
    %15 = vector.extract_strided_slice %14 {offsets = [0, 0], sizes = [64, 1], strides = [1, 1]} : vector<64x2xf32> to vector<64x1xf32>
    %16 = arith.mulf %13, %13 : vector<64x512xf32>
    %cst_6 = arith.constant dense<0.000000e+00> : vector<64x2xf32>
    %17 = tpu.matmul %16, %0, %cst_6 {dimension_numbers = #tpu.dot_dimension_numbers<[1], [0], [0], [1], [0, 0, 1, 1], [], []>} : vector<64x512xf32>, vector<512x2xf32>, vector<64x2xf32> -> vector<64x2xf32>
    %18 = vector.extract_strided_slice %17 {offsets = [0, 0], sizes = [64, 1], strides = [1, 1]} : vector<64x2xf32> to vector<64x1xf32>
    %cst_7 = arith.constant 0.00255102036 : f32
    %19 = vector.broadcast %cst_7 : f32 to vector<64x1xf32>
    %20 = arith.mulf %15, %19 : vector<64x1xf32>
    %cst_8 = arith.constant 0.00255102036 : f32
    %21 = vector.broadcast %cst_8 : f32 to vector<64x1xf32>
    %22 = arith.mulf %18, %21 : vector<64x1xf32>
    %23 = arith.mulf %20, %20 : vector<64x1xf32>
    %24 = arith.subf %22, %23 : vector<64x1xf32>
    %c0_9 = arith.constant 0 : index
    %c0_10 = arith.constant 0 : index
    %25 = vector.load %arg3[%c0_9, %c0_10] : memref<64x1xf32, #tpu.memory_space<vmem>>, vector<64x1xf32>
    %cst_11 = arith.constant 9.99999974E-6 : f32
    %26 = vector.broadcast %cst_11 : f32 to vector<64x1xf32>
    %27 = arith.addf %24, %26 : vector<64x1xf32>
    %28 = math.rsqrt %27 : vector<64x1xf32>
    %29 = arith.mulf %25, %28 : vector<64x1xf32>
    %c0_12 = arith.constant 0 : index
    %c0_13 = arith.constant 0 : index
    %30 = vector.load %arg4[%c0_12, %c0_13] : memref<64x1xf32, #tpu.memory_space<vmem>>, vector<64x1xf32>
    %31 = arith.mulf %20, %29 : vector<64x1xf32>
    %32 = arith.subf %30, %31 : vector<64x1xf32>
    %33 = vector.broadcast %29 : vector<64x1xf32> to vector<64x512xf32>
    %34 = arith.mulf %13, %33 : vector<64x512xf32>
    %35 = vector.broadcast %32 : vector<64x1xf32> to vector<64x512xf32>
    %36 = arith.addf %34, %35 : vector<64x512xf32>
    %cst_14 = arith.constant 0.000000e+00 : f32
    %37 = vector.broadcast %cst_14 : f32 to vector<64x512xf32>
    %38 = arith.cmpf ogt, %36, %37 : vector<64x512xf32>
    %cst_15 = arith.constant 5.000000e-02 : f32
    %39 = vector.broadcast %cst_15 : f32 to vector<64x512xf32>
    %40 = arith.mulf %39, %36 : vector<64x512xf32>
    %41 = arith.select %38, %36, %40 : vector<64x512xi1>, vector<64x512xf32>
    %42 = arith.truncf %41 : vector<64x512xf32> to vector<64x512xbf16>
    %cst_16 = arith.constant 0.000000e+00 : f32
    %43 = vector.broadcast %cst_16 : f32 to vector<4x512xf32>
    %c0_17 = arith.constant 0 : index
    %c0_18 = arith.constant 0 : index
    %c0_19 = arith.constant 0 : index
    %44 = vector.load %arg2[%c0_17, %c0_18, %c0_19] : memref<9x4x64xbf16, #tpu.memory_space<vmem>>, vector<1x4x64xbf16>
    %45 = vector.shape_cast %44 : vector<1x4x64xbf16> to vector<4x64xbf16>
    %cst_20 = arith.constant dense<0.000000e+00> : vector<4x512xf32>
    %46 = tpu.matmul %45, %42, %cst_20 {dimension_numbers = #tpu.dot_dimension_numbers<[1], [0], [0], [1], [0, 0, 1, 1], [], []>} : vector<4x64xbf16>, vector<64x512xbf16>, vector<4x512xf32> -> vector<4x512xf32>
    %47 = arith.addf %43, %46 : vector<4x512xf32>
    %c1 = arith.constant 1 : index
    %c0_21 = arith.constant 0 : index
    %c0_22 = arith.constant 0 : index
    %48 = vector.load %arg2[%c1, %c0_21, %c0_22] : memref<9x4x64xbf16, #tpu.memory_space<vmem>>, vector<1x4x64xbf16>
    %49 = vector.shape_cast %48 : vector<1x4x64xbf16> to vector<4x64xbf16>
    %cst_23 = arith.constant dense<0.000000e+00> : vector<4x512xf32>
    %50 = tpu.matmul %49, %42, %cst_23 {dimension_numbers = #tpu.dot_dimension_numbers<[1], [0], [0], [1], [0, 0, 1, 1], [], []>} : vector<4x64xbf16>, vector<64x512xbf16>, vector<4x512xf32> -> vector<4x512xf32>
    %c511_i32_24 = arith.constant 511 : i32
    %51 = tpu.dynamic_rotate %50 by %c511_i32_24 dim 1 : vector<4x512xf32>, i32 -> vector<4x512xf32>
    %52 = arith.addf %47, %51 : vector<4x512xf32>
    %c2 = arith.constant 2 : index
    %c0_25 = arith.constant 0 : index
    %c0_26 = arith.constant 0 : index
    %53 = vector.load %arg2[%c2, %c0_25, %c0_26] : memref<9x4x64xbf16, #tpu.memory_space<vmem>>, vector<1x4x64xbf16>
    %54 = vector.shape_cast %53 : vector<1x4x64xbf16> to vector<4x64xbf16>
    %cst_27 = arith.constant dense<0.000000e+00> : vector<4x512xf32>
    %55 = tpu.matmul %54, %42, %cst_27 {dimension_numbers = #tpu.dot_dimension_numbers<[1], [0], [0], [1], [0, 0, 1, 1], [], []>} : vector<4x64xbf16>, vector<64x512xbf16>, vector<4x512xf32> -> vector<4x512xf32>
    %c510_i32_28 = arith.constant 510 : i32
    %56 = tpu.dynamic_rotate %55 by %c510_i32_28 dim 1 : vector<4x512xf32>, i32 -> vector<4x512xf32>
    %57 = arith.addf %52, %56 : vector<4x512xf32>
    %c3 = arith.constant 3 : index
    %c0_29 = arith.constant 0 : index
    %c0_30 = arith.constant 0 : index
    %58 = vector.load %arg2[%c3, %c0_29, %c0_30] : memref<9x4x64xbf16, #tpu.memory_space<vmem>>, vector<1x4x64xbf16>
    %59 = vector.shape_cast %58 : vector<1x4x64xbf16> to vector<4x64xbf16>
    %cst_31 = arith.constant dense<0.000000e+00> : vector<4x512xf32>
    %60 = tpu.matmul %59, %42, %cst_31 {dimension_numbers = #tpu.dot_dimension_numbers<[1], [0], [0], [1], [0, 0, 1, 1], [], []>} : vector<4x64xbf16>, vector<64x512xbf16>, vector<4x512xf32> -> vector<4x512xf32>
    %c496_i32_32 = arith.constant 496 : i32
    %61 = tpu.dynamic_rotate %60 by %c496_i32_32 dim 1 : vector<4x512xf32>, i32 -> vector<4x512xf32>
    %62 = arith.addf %57, %61 : vector<4x512xf32>
    %c4 = arith.constant 4 : index
    %c0_33 = arith.constant 0 : index
    %c0_34 = arith.constant 0 : index
    %63 = vector.load %arg2[%c4, %c0_33, %c0_34] : memref<9x4x64xbf16, #tpu.memory_space<vmem>>, vector<1x4x64xbf16>
    %64 = vector.shape_cast %63 : vector<1x4x64xbf16> to vector<4x64xbf16>
    %cst_35 = arith.constant dense<0.000000e+00> : vector<4x512xf32>
    %65 = tpu.matmul %64, %42, %cst_35 {dimension_numbers = #tpu.dot_dimension_numbers<[1], [0], [0], [1], [0, 0, 1, 1], [], []>} : vector<4x64xbf16>, vector<64x512xbf16>, vector<4x512xf32> -> vector<4x512xf32>
    %c495_i32_36 = arith.constant 495 : i32
    %66 = tpu.dynamic_rotate %65 by %c495_i32_36 dim 1 : vector<4x512xf32>, i32 -> vector<4x512xf32>
    %67 = arith.addf %62, %66 : vector<4x512xf32>
    %c5 = arith.constant 5 : index
    %c0_37 = arith.constant 0 : index
    %c0_38 = arith.constant 0 : index
    %68 = vector.load %arg2[%c5, %c0_37, %c0_38] : memref<9x4x64xbf16, #tpu.memory_space<vmem>>, vector<1x4x64xbf16>
    %69 = vector.shape_cast %68 : vector<1x4x64xbf16> to vector<4x64xbf16>
    %cst_39 = arith.constant dense<0.000000e+00> : vector<4x512xf32>
    %70 = tpu.matmul %69, %42, %cst_39 {dimension_numbers = #tpu.dot_dimension_numbers<[1], [0], [0], [1], [0, 0, 1, 1], [], []>} : vector<4x64xbf16>, vector<64x512xbf16>, vector<4x512xf32> -> vector<4x512xf32>
    %c494_i32_40 = arith.constant 494 : i32
    %71 = tpu.dynamic_rotate %70 by %c494_i32_40 dim 1 : vector<4x512xf32>, i32 -> vector<4x512xf32>
    %72 = arith.addf %67, %71 : vector<4x512xf32>
    %c6 = arith.constant 6 : index
    %c0_41 = arith.constant 0 : index
    %c0_42 = arith.constant 0 : index
    %73 = vector.load %arg2[%c6, %c0_41, %c0_42] : memref<9x4x64xbf16, #tpu.memory_space<vmem>>, vector<1x4x64xbf16>
    %74 = vector.shape_cast %73 : vector<1x4x64xbf16> to vector<4x64xbf16>
    %cst_43 = arith.constant dense<0.000000e+00> : vector<4x512xf32>
    %75 = tpu.matmul %74, %42, %cst_43 {dimension_numbers = #tpu.dot_dimension_numbers<[1], [0], [0], [1], [0, 0, 1, 1], [], []>} : vector<4x64xbf16>, vector<64x512xbf16>, vector<4x512xf32> -> vector<4x512xf32>
    %c480_i32_44 = arith.constant 480 : i32
    %76 = tpu.dynamic_rotate %75 by %c480_i32_44 dim 1 : vector<4x512xf32>, i32 -> vector<4x512xf32>
    %77 = arith.addf %72, %76 : vector<4x512xf32>
    %c7 = arith.constant 7 : index
    %c0_45 = arith.constant 0 : index
    %c0_46 = arith.constant 0 : index
    %78 = vector.load %arg2[%c7, %c0_45, %c0_46] : memref<9x4x64xbf16, #tpu.memory_space<vmem>>, vector<1x4x64xbf16>
    %79 = vector.shape_cast %78 : vector<1x4x64xbf16> to vector<4x64xbf16>
    %cst_47 = arith.constant dense<0.000000e+00> : vector<4x512xf32>
    %80 = tpu.matmul %79, %42, %cst_47 {dimension_numbers = #tpu.dot_dimension_numbers<[1], [0], [0], [1], [0, 0, 1, 1], [], []>} : vector<4x64xbf16>, vector<64x512xbf16>, vector<4x512xf32> -> vector<4x512xf32>
    %c479_i32_48 = arith.constant 479 : i32
    %81 = tpu.dynamic_rotate %80 by %c479_i32_48 dim 1 : vector<4x512xf32>, i32 -> vector<4x512xf32>
    %82 = arith.addf %77, %81 : vector<4x512xf32>
    %c8 = arith.constant 8 : index
    %c0_49 = arith.constant 0 : index
    %c0_50 = arith.constant 0 : index
    %83 = vector.load %arg2[%c8, %c0_49, %c0_50] : memref<9x4x64xbf16, #tpu.memory_space<vmem>>, vector<1x4x64xbf16>
    %84 = vector.shape_cast %83 : vector<1x4x64xbf16> to vector<4x64xbf16>
    %cst_51 = arith.constant dense<0.000000e+00> : vector<4x512xf32>
    %85 = tpu.matmul %84, %42, %cst_51 {dimension_numbers = #tpu.dot_dimension_numbers<[1], [0], [0], [1], [0, 0, 1, 1], [], []>} : vector<4x64xbf16>, vector<64x512xbf16>, vector<4x512xf32> -> vector<4x512xf32>
    %c478_i32_52 = arith.constant 478 : i32
    %86 = tpu.dynamic_rotate %85 by %c478_i32_52 dim 1 : vector<4x512xf32>, i32 -> vector<4x512xf32>
    %87 = arith.addf %82, %86 : vector<4x512xf32>
    %cst_53 = arith.constant dense<0.000000e+00> : vector<4x2xf32>
    %88 = tpu.matmul %87, %0, %cst_53 {dimension_numbers = #tpu.dot_dimension_numbers<[1], [0], [0], [1], [0, 0, 1, 1], [], []>} : vector<4x512xf32>, vector<512x2xf32>, vector<4x2xf32> -> vector<4x2xf32>
    %89 = vector.extract_strided_slice %88 {offsets = [0, 1], sizes = [4, 1], strides = [1, 1]} : vector<4x2xf32> to vector<4x1xf32>
    %90 = arith.mulf %87, %87 : vector<4x512xf32>
    %cst_54 = arith.constant dense<0.000000e+00> : vector<4x2xf32>
    %91 = tpu.matmul %90, %0, %cst_54 {dimension_numbers = #tpu.dot_dimension_numbers<[1], [0], [0], [1], [0, 0, 1, 1], [], []>} : vector<4x512xf32>, vector<512x2xf32>, vector<4x2xf32> -> vector<4x2xf32>
    %92 = vector.extract_strided_slice %91 {offsets = [0, 1], sizes = [4, 1], strides = [1, 1]} : vector<4x2xf32> to vector<4x1xf32>
    %cst_55 = arith.constant 0.00347222225 : f32
    %93 = vector.broadcast %cst_55 : f32 to vector<4x1xf32>
    %94 = arith.mulf %89, %93 : vector<4x1xf32>
    %cst_56 = arith.constant 0.00347222225 : f32
    %95 = vector.broadcast %cst_56 : f32 to vector<4x1xf32>
    %96 = arith.mulf %92, %95 : vector<4x1xf32>
    %97 = arith.mulf %94, %94 : vector<4x1xf32>
    %98 = arith.subf %96, %97 : vector<4x1xf32>
    %c0_57 = arith.constant 0 : index
    %c0_58 = arith.constant 0 : index
    %99 = vector.load %arg5[%c0_57, %c0_58] : memref<4x1xf32, #tpu.memory_space<vmem>>, vector<4x1xf32>
    %cst_59 = arith.constant 9.99999974E-6 : f32
    %100 = vector.broadcast %cst_59 : f32 to vector<4x1xf32>
    %101 = arith.addf %98, %100 : vector<4x1xf32>
    %102 = math.rsqrt %101 : vector<4x1xf32>
    %103 = arith.mulf %99, %102 : vector<4x1xf32>
    %c0_60 = arith.constant 0 : index
    %c0_61 = arith.constant 0 : index
    %104 = vector.load %arg6[%c0_60, %c0_61] : memref<4x1xf32, #tpu.memory_space<vmem>>, vector<4x1xf32>
    %105 = arith.mulf %94, %103 : vector<4x1xf32>
    %106 = arith.subf %104, %105 : vector<4x1xf32>
    %107 = vector.broadcast %103 : vector<4x1xf32> to vector<4x512xf32>
    %108 = arith.mulf %87, %107 : vector<4x512xf32>
    %109 = vector.broadcast %106 : vector<4x1xf32> to vector<4x512xf32>
    %110 = arith.addf %108, %109 : vector<4x512xf32>
    %111 = vector.extract_strided_slice %9 {offsets = [0, 0], sizes = [4, 512], strides = [1, 1]} : vector<8x512xf32> to vector<4x512xf32>
    %112 = arith.addf %110, %111 : vector<4x512xf32>
    %cst_62 = arith.constant 0.000000e+00 : f32
    %113 = vector.broadcast %cst_62 : f32 to vector<4x512xf32>
    %114 = arith.cmpf ogt, %112, %113 : vector<4x512xf32>
    %cst_63 = arith.constant 5.000000e-02 : f32
    %115 = vector.broadcast %cst_63 : f32 to vector<4x512xf32>
    %116 = arith.mulf %115, %112 : vector<4x512xf32>
    %117 = arith.select %114, %112, %116 : vector<4x512xi1>, vector<4x512xf32>
    %c0_64 = arith.constant 0 : index
    %c0_65 = arith.constant 0 : index
    %118 = vector.load %arg8[%c0_64, %c0_65] : memref<4x512xf32, #tpu.memory_space<vmem>>, vector<4x512xf32>
    tpu.vector_store %arg8[%c0_64, %c0_65], %117 {strides = array<i32>} : memref<4x512xf32, #tpu.memory_space<vmem>>, vector<4x512xf32>,
    return
  }
}

</mosaic_0001>

<bundles_post_ra>
// kernel: tpu_custom_call.1
= control target key start
LH: loop header
LB: loop body
LE: loop exit
PB: predicated region body
PF: predicated region fallthrough
CT: control target
= control target key end

     0   :  { %s2312_s11 = smov 94   ;;  %s4325_s0 = inlined_call_operand.vmem [shape: f32[8,512], index: 0, kind: input, shape index: {}]   ;;  %s4326_s1 = inlined_call_operand.vmem [shape: bf16[64,72], index: 1, kind: input, shape index: {}]   ;;  %s4327_s2 = inlined_call_operand.vmem [shape: bf16[9,4,64], index: 2, kind: input, shape index: {}]   ;;  %s4328_s3 = inlined_call_operand.vmem [shape: f32[64,1], index: 3, kind: input, shape index: {}]   ;;  %s4329_s4 = inlined_call_operand.vmem [shape: f32[64,1], index: 4, kind: input, shape index: {}]   ;;  %s4330_s5 = inlined_call_operand.vmem [shape: f32[4,1], index: 5, kind: input, shape index: {}]   ;;  %s4331_s6 = inlined_call_operand.vmem [shape: f32[4,1], index: 6, kind: input, shape index: {}]   ;;  %s4332_s7 = inlined_call_operand.vmem [shape: f32[512,2], index: 7, kind: input, shape index: {}]   ;;  %s4333_s8 = inlined_call_operand.hbm [shape: f32[4,512], index: 8, kind: output, shape index: {}]  }
   0x1   :  { %v2371_v0 = vld [vmem:[%s4325_s0 + $0x10] sm:$0xff]  ;;  %v2376_v1 = vld [vmem:[%s4325_s0] sm:$0xff]  ;;  %v2381_v2 = vld [vmem:[%s4325_s0 + $0x18] sm:$0xff] }
   0x2   :  { %196 = vrot.lane.b32.xlu0 %v2371_v0, %s2312_s11  ;;  %192 = vrot.lane.b32.xlu1 %v2376_v1, %s2312_s11  ;;  %v2161_v3 = vpack.i.bf16 %v2381_v2, %v2371_v0 }
   0x3   :  { %13 = vsyncpa [#allocation3], 0  ;;  %s2313_s12 = smov 95   ;;  %v2393_v4 = vld [vmem:[%s4325_s0 + $0x8] sm:$0xff]  ;;  %s2314_s15 = smov 96   ;;  %v107_v7 = vlaneseq  ;;  %vm4360_vm1 = vcmask 1043456  }
   0x4   :  { %2162 = vrot.lane.b32.xlu2 %v2161_v3, %s2313_s12  ;;  %v2166_v5 = vpack.i.bf16 %v2393_v4, %v2376_v1  ;;  %s2315_s16 = smov 111   ;;  %s2316_s17 = smov 110   ;;  %vm253_vm9 = vcmask 588800  }
   0x5   :  { %s2317_s0 = smov 126   ;;  %s2318_s18 = smov 112   ;;  %v2433_v11 = vand.u32 127, %v107_v7 }
   0x6   :  { %s2319_s19 = smov 127  }
   0x7   :  { %4365 = vst [vmem:[#allocation5_spill] sm:$0xff] %v2433_v11  ;;  %vm4361_vm0 = vcmp.lt.s32.totalorder %v2433_v11, 94  ;;  %vm4363_vm2 = vcmp.lt.s32.totalorder %v2433_v11, 96  ;;  %vm4362_vm3 = vcmp.lt.s32.totalorder %v2433_v11, 95  ;;  %vm161_vm4 = vcmp.lt.s32.totalorder %v2433_v11, 110 }
   0x8   :  { %vm148_vm5 = vcmp.lt.s32.totalorder %v2433_v11, 111  ;;  %vm122_vm6 = vcmp.lt.s32.totalorder %v2433_v11, 126  ;;  %vm135_vm7 = vcmp.lt.s32.totalorder %v2433_v11, 112  ;;  %vm109_vm8 = vcmp.lt.s32.totalorder %v2433_v11, 127 }
   0xa   :  { %198 = vrot.lane.b32.xlu0 %v2381_v2, %s2312_s11  ;;  %2157 = vrot.lane.b32.xlu1 %v2161_v3, %s2314_s15 }
   0xc   :  { %2167 = vrot.lane.b32.xlu2 %v2166_v5, %s2314_s15 }
  0x12   :  { %2172 = vrot.lane.b32.xlu0 %v2166_v5, %s2313_s12  ;;  %2177 = vrot.lane.b32.xlu1 %v2161_v3, %s2315_s16 }
  0x14   :  { %2182 = vrot.lane.b32.xlu2 %v2161_v3, %s2316_s17 }
  0x1a   :  { %194 = vrot.lane.b32.xlu0 %v2393_v4, %s2312_s11  ;;  %140 = vrot.lane.b32.xlu1 %v2376_v1, %s2315_s16 }
  0x1c   :  { %153 = vrot.lane.b32.xlu2 %v2376_v1, %s2316_s17 }
  0x22   :  { %2187 = vrot.lane.b32.xlu0 %v2161_v3, %s2317_s0  ;;  %2192 = vrot.lane.b32.xlu1 %v2161_v3, %s2318_s18 }
  0x24   :  { %114 = vrot.lane.b32.xlu2 %v2376_v1, %s2317_s0 }
  0x2a   :  { %127 = vrot.lane.b32.xlu0 %v2376_v1, %s2318_s18  ;;  %2197 = vrot.lane.b32.xlu1 %v2161_v3, %s2319_s19 }
  0x2c   :  { %99 = vrot.lane.b32.xlu2 %v2376_v1, %s2319_s19 }
  0x32   :  { %142 = vrot.lane.b32.xlu0 %v2393_v4, %s2315_s16  ;;  %155 = vrot.lane.b32.xlu1 %v2393_v4, %s2316_s17 }
  0x34   :  { %116 = vrot.lane.b32.xlu2 %v2393_v4, %s2317_s0 }
  0x3a   :  { %129 = vrot.lane.b32.xlu0 %v2393_v4, %s2318_s18  ;;  %101 = vrot.lane.b32.xlu1 %v2393_v4, %s2319_s19 }
  0x5e   :  { %v2429_v6 = vpop.permute.xlu2 %2162 }
  0x5f   :  { %v2165_v12 = vunpack.i.h.bf16 %v2429_v6  ;;  %v2164_v13 = vunpack.i.l.bf16 %v2429_v6 }
  0x61   :  { %v188_v26 = vsel %vm4362_vm3, %v2164_v13, %v2165_v12 }
  0x66   :  { %v2431_v10 = vpop.permute.xlu2 %2167 }
  0x67   :  { %v2169_v29 = vunpack.i.l.bf16 %v2431_v10  ;;  %v2170_v47 = vunpack.i.h.bf16 %v2431_v10 }
  0x69   :  { %v177_v54 = vsel %vm4363_vm2, %v2169_v29, %v2170_v47 }
  0x6e   :  { %v2452_v22 = vpop.permute.xlu2 %2182 }
  0x6f   :  { %v2185_v27 = vunpack.i.h.bf16 %v2452_v22  ;;  %v2184_v28 = vunpack.i.l.bf16 %v2452_v22 }
  0x71   :  { %v162_v36 = vsel %vm161_vm4, %v2184_v28, %v2185_v27 }
  0x74   :  { %v197_v8 = vpop.permute.xlu0 %196  ;;  %v193_v9 = vpop.permute.xlu1 %192 }
  0x76   :  { %v2481_v42 = vpop.permute.xlu2 %153 }
  0x77   :  { %v165_v43 = vsel %vm161_vm4, %v2185_v27, %v2481_v42 }
  0x7c   :  { %v199_v14 = vpop.permute.xlu0 %198  ;;  %v2158_v15 = vpop.permute.xlu1 %2157 }
  0x7d   :  { %v2442_v16 = vsel %vm4361_vm0, %v197_v8, %v199_v14  ;;  %v2446_v17 = vsel %vm4361_vm0, %v199_v14, %v193_v9  ;;  %v2160_v18 = vunpack.i.h.bf16 %v2158_v15  ;;  %v2159_v19 = vunpack.i.l.bf16 %v2158_v15 }
  0x7e   :  { %4366 = vst [vmem:[#allocation6_spill] sm:$0xff] %v2442_v16  ;;  %v223_v20 = vpack.c.bf16 %v2442_v16, %v2442_v16  ;;  %v224_v21 = vpack.c.bf16 %v2446_v17, %v2446_v17  ;;  %v115_v60 = vpop.permute.xlu2 %114 }
  0x7f   :  { %4367 = vst [vmem:[#allocation7_spill] sm:$0xff] %v2446_v17  ;;  %v175_v25 = vsel %vm4363_vm2, %v2159_v19, %v2160_v18  ;;  %v178_v37 = vsel %vm4363_vm2, %v2160_v18, %v2169_v29  ;;  %v176_v59 = vsel %vm4363_vm2, %v2170_v47, %v2159_v19  ;;  %v2141_v29 = vld [vmem:[%s4326_s1] sm:$0xff] }
  0x80   :  { %v274_v23 = vsel %vm4360_vm1, %v223_v20, 0  ;;  %v277_v24 = vsel %vm4360_vm1, %v224_v21, 0  ;;  %v219_v30 = vpack.c.bf16 %v188_v26, %v175_v25 }
  0x81   :  { %340 = vmatpush.bf16.msra.mxu2 %v274_v23  ;;  %369 = vmatpush.bf16.msra.mxu3 %v277_v24 }
  0x84   :  { %v2173_v31 = vpop.permute.xlu0 %2172  ;;  %v2464_v32 = vpop.permute.xlu1 %2177 }
  0x85   :  { %v2174_v33 = vunpack.i.l.bf16 %v2173_v31  ;;  %v2180_v34 = vunpack.i.h.bf16 %v2464_v32  ;;  %v2179_v35 = vunpack.i.l.bf16 %v2464_v32  ;;  %341 = vmatpush.bf16.msra.mxu2 %v219_v30  ;;  %v2175_v44 = vunpack.i.h.bf16 %v2173_v31 }
  0x86   :  { %v100_v21 = vpop.permute.xlu2 %99 }
  0x87   :  { %v191_v38 = vsel %vm4362_vm3, %v2165_v12, %v2174_v33  ;;  %v149_v39 = vsel %vm148_vm5, %v2179_v35, %v2180_v34  ;;  %v190_v57 = vsel %vm4362_vm3, %v2174_v33, %v2175_v44  ;;  %v189_v58 = vsel %vm4362_vm3, %v2175_v44, %v2164_v13 }
  0x88   :  { %v220_v40 = vpack.c.bf16 %v191_v38, %v178_v37  ;;  %v215_v41 = vpack.c.bf16 %v162_v36, %v149_v39  ;;  %v217_v61 = vpack.c.bf16 %v190_v57, %v177_v54  ;;  %v218_v62 = vpack.c.bf16 %v189_v58, %v176_v59  ;;  %v2609_v54 = vld [vmem:[%s4332_s7 + $0x1e8] sm:$0xff]  ;;  %v2626_v57 = vld [vmem:[%s4332_s7 + $0xf8] sm:$0xff]  ;;  %v2632_v58 = vld [vmem:[%s4332_s7 + $0x1e0] sm:$0xff] }
  0x89   :  { %v2638_v59 = vld [vmem:[%s4332_s7 + $0x70] sm:$0xff] }
  0x8a   :  { %370 = vmatpush.bf16.msra.mxu3 %v220_v40  ;;  %342 = vmatpush.bf16.msra.mxu2 %v215_v41 }
  0x8c   :  { %v195_v45 = vpop.permute.xlu0 %194  ;;  %v141_v46 = vpop.permute.xlu1 %140 }
  0x8d   :  { %v2489_v48 = vsel %vm4361_vm0, %v195_v45, %v197_v8  ;;  %v2493_v49 = vsel %vm4361_vm0, %v193_v9, %v195_v45  ;;  %v152_v50 = vsel %vm148_vm5, %v2180_v34, %v141_v46  ;;  %v2142_v45 = vld [vmem:[%s4326_s1 + $0x8] sm:$0xff] }
  0x8e   :  { %4368 = vst [vmem:[#allocation8_spill] sm:$0xff] %v2489_v48  ;;  %v216_v51 = vpack.c.bf16 %v165_v43, %v152_v50  ;;  %v221_v52 = vpack.c.bf16 %v2493_v49, %v2493_v49  ;;  %v222_v53 = vpack.c.bf16 %v2489_v48, %v2489_v48  ;;  %v117_v32 = vpop.permute.xlu2 %116  ;;  %v2570_v50 = vld [vmem:[%s4326_s1 + $0x10] sm:$0xff] }
  0x8f   :  { %4369 = vst [vmem:[#allocation9_spill] sm:$0xff] %v2493_v49 }
  0x90   :  { %371 = vmatpush.bf16.msra.mxu3 %v216_v51  ;;  %v268_v55 = vsel %vm4360_vm1, %v221_v52, 0  ;;  %v271_v56 = vsel %vm4360_vm1, %v222_v53, 0  ;;  %v2589_v51 = vld [vmem:[%s4332_s7 + $0x1f8] sm:$0xff]  ;;  %v2597_v52 = vld [vmem:[%s4332_s7 + $0x1f0] sm:$0xff]  ;;  %v2603_v53 = vld [vmem:[%s4332_s7 + $0x168] sm:$0xff] }
  0x91   :  { %282 = vmatpush.bf16.msra.mxu0 %v268_v55  ;;  %311 = vmatpush.bf16.msra.mxu1 %v271_v56  ;;  %v2614_v55 = vld [vmem:[%s4332_s7 + $0x78] sm:$0xff]  ;;  %v2620_v56 = vld [vmem:[%s4332_s7 + $0x160] sm:$0xff] }
  0x94   :  { %v2188_v63 = vpop.permute.xlu0 %2187  ;;  %v2193_v3 = vpop.permute.xlu1 %2192 }
  0x95   :  { %v2190_v5 = vunpack.i.h.bf16 %v2188_v63  ;;  %v2189_v6 = vunpack.i.l.bf16 %v2188_v63  ;;  %v2195_v7 = vunpack.i.h.bf16 %v2193_v3  ;;  %v2194_v8 = vunpack.i.l.bf16 %v2193_v3  ;;  %283 = vmatpush.bf16.msra.mxu0 %v217_v61  ;;  %312 = vmatpush.bf16.msra.mxu1 %v218_v62  ;;  %v2649_v61 = vld [vmem:[%s4332_s7 + $0x158] sm:$0xff]  ;;  %v2655_v62 = vld [vmem:[%s4332_s7 + $0x68] sm:$0xff] }
  0x96   :  { %v2660_v63 = vld [vmem:[%s4332_s7 + $0xe8] sm:$0xff]  ;;  %v2666_v3 = vld [vmem:[%s4332_s7 + $0x1d8] sm:$0xff] }
  0x97   :  { %v123_v9 = vsel %vm122_vm6, %v2189_v6, %v2190_v5  ;;  %v136_v10 = vsel %vm135_vm7, %v2194_v8, %v2195_v7  ;;  %v126_v20 = vsel %vm122_vm6, %v2190_v5, %v115_v60  ;;  %v124_v22 = vsel %vm122_vm6, %v117_v32, %v2189_v6  ;;  %v2672_v5 = vld [vmem:[%s4332_s7 + $0x60] sm:$0xff]  ;;  %v2678_v6 = vld [vmem:[%s4332_s7 + $0x150] sm:$0xff] }
  0x98   :  { %v211_v12 = vpack.c.bf16 %v136_v10, %v123_v9  ;;  %v2696_v9 = vld [vmem:[%s4332_s7 + $0x58] sm:$0xff] }
  0x99   :  { %v2701_v10 = vld [vmem:[%s4326_s1 + $0x18] sm:$0xff] }
  0x9a   :  { %343 = vmatpush.bf16.msra.mxu2 %v211_v12  ;;  %v2707_v12 = vld [vmem:[%s4332_s7 + $0x148] sm:$0xff] }
  0x9c   :  { %v128_v13 = vpop.permute.xlu0 %127  ;;  %v2198_v14 = vpop.permute.xlu1 %2197 }
  0x9d   :  { %v139_v15 = vsel %vm135_vm7, %v2195_v7, %v128_v13  ;;  %v2200_v18 = vunpack.i.h.bf16 %v2198_v14  ;;  %v2199_v19 = vunpack.i.l.bf16 %v2198_v14  ;;  %v2684_v7 = vld [vmem:[%s4332_s7 + $0xe0] sm:$0xff]  ;;  %v2719_v14 = vld [vmem:[%s4332_s7 + $0x1c8] sm:$0xff] }
  0x9e   :  { %v212_v23 = vpack.c.bf16 %v139_v15, %v126_v20  ;;  %v2726_v15 = vld [vmem:[%s4332_s7 + $0x140] sm:$0xff] }
  0x9f   :  { %v110_v24 = vsel %vm109_vm8, %v2199_v19, %v2200_v18  ;;  %v113_v25 = vsel %vm109_vm8, %v2200_v18, %v100_v21  ;;  %v2732_v18 = vld [vmem:[%s4332_s7 + $0x50] sm:$0xff]  ;;  %v2748_v20 = vld [vmem:[%s4332_s7 + $0x1c0] sm:$0xff] }
  0xa0   :  { %372 = vmatpush.bf16.msra.mxu3 %v212_v23  ;;  %v207_v26 = vpack.c.bf16 %v110_v24, %v2371_v0  ;;  %v208_v27 = vpack.c.bf16 %v113_v25, %v2381_v2  ;;  %v2763_v23 = vld [vmem:[%s4332_s7 + $0x130] sm:$0xff]  ;;  %v2768_v24 = vld [vmem:[%s4332_s7 + $0x48] sm:$0xff]  ;;  %v2776_v25 = vld [vmem:[%s4332_s7 + $0x1b8] sm:$0xff] }
  0xa2   :  { %344 = vmatpush.bf16.msra.mxu2 %v207_v26  ;;  %v2781_v26 = vld [vmem:[%s4332_s7 + $0xc8] sm:$0xff] }
  0xa4   :  { %v143_v30 = vpop.permute.xlu0 %142  ;;  %v156_v31 = vpop.permute.xlu1 %155  ;;  %373 = vmatpush.bf16.msra.mxu3 %v208_v27  ;;  %v2787_v27 = vld [vmem:[%s4332_s7 + $0x128] sm:$0xff] }
  0xa5   :  { %v150_v33 = vsel %vm148_vm5, %v143_v30, %v2179_v35  ;;  %v151_v34 = vsel %vm148_vm5, %v141_v46, %v143_v30  ;;  %v163_v0 = vsel %vm161_vm4, %v156_v31, %v2184_v28  ;;  %v164_v2 = vsel %vm161_vm4, %v2481_v42, %v156_v31  ;;  %2089 = vmatmul.msk.bf16.vlgmr.msra.gmra.mxu2 %vm253_vm9, %v2141_v29  ;;  %v2799_v30 = vld [vmem:[%s4332_s7 + $0x1b0] sm:$0xff]  ;;  %v2805_v31 = vld [vmem:[%s4332_s7 + $0xc0] sm:$0xff] }
  0xa6   :  { %v213_v36 = vpack.c.bf16 %v164_v2, %v151_v34  ;;  %v214_v37 = vpack.c.bf16 %v163_v0, %v150_v33  ;;  %v125_v28 = vsel %vm122_vm6, %v115_v60, %v117_v32  ;;  %v2643_v60 = vld [vmem:[%s4332_s7 + $0xf0] sm:$0xff]  ;;  %v2811_v33 = vld [vmem:[%s4332_s7 + $0x120] sm:$0xff]  ;;  %v2817_v34 = vld [vmem:[%s4332_s7 + $0x38] sm:$0xff] }
  0xa7   :  { %2093 = vmatmul.msk.bf16.vlgmr.msra.gmra.mxu3 %vm253_vm9, %v2141_v29  ;;  %v2823_v0 = vld [vmem:[%s4332_s7 + $0x1a8] sm:$0xff]  ;;  %v2829_v2 = vld [vmem:[%s4332_s7 + $0xb8] sm:$0xff]  ;;  %v2849_v32 = vld [vmem:[%s4332_s7 + $0x110] sm:$0xff] }
  0xa8   :  { %284 = vmatpush.bf16.msra.mxu0 %v213_v36  ;;  %313 = vmatpush.bf16.msra.mxu1 %v214_v37  ;;  %v2835_v36 = vld [vmem:[%s4332_s7 + $0x118] sm:$0xff]  ;;  %v2842_v37 = vld [vmem:[%s4332_s7 + $0x1a0] sm:$0xff] }
  0xa9   :  { %518 = vmatpush.msrb.mxu3 %v2589_v51 }
  0xab   :  { %519 = vmatpush.msrb.mxu3 %v2597_v52 }
  0xac   :  { %v130_v35 = vpop.permute.xlu0 %129  ;;  %v102_v38 = vpop.permute.xlu1 %101 }
  0xad   :  { %v137_v39 = vsel %vm135_vm7, %v130_v35, %v2194_v8  ;;  %v138_v40 = vsel %vm135_vm7, %v128_v13, %v130_v35  ;;  %v111_v43 = vsel %vm109_vm8, %v102_v38, %v2199_v19  ;;  %v112_v44 = vsel %vm109_vm8, %v100_v21, %v102_v38  ;;  %520 = vmatpush.msrb.mxu3 %v2609_v54  ;;  %v2690_v8 = vld [vmem:[%s4332_s7 + $0x1d0] sm:$0xff]  ;;  %v2713_v13 = vld [vmem:[%s4332_s7 + $0xd8] sm:$0xff]  ;;  %v2862_v38 = vld [vmem:[%s4332_s7 + $0x108] sm:$0xff] }
  0xae   :  { %v209_v41 = vpack.c.bf16 %v138_v40, %v125_v28  ;;  %v210_v42 = vpack.c.bf16 %v137_v39, %v124_v22  ;;  %v205_v46 = vpack.c.bf16 %v112_v44, %v2376_v1  ;;  %v206_v47 = vpack.c.bf16 %v111_v43, %v2393_v4  ;;  %v2579_v1 = vld [vmem:[%s4332_s7 + $0x178] sm:$0xff]  ;;  %v2584_v4 = vld [vmem:[%s4332_s7 + $0x170] sm:$0xff]  ;;  %v2890_v40 = vld [vmem:[%s4332_s7 + $0x100] sm:$0xff] }
  0xaf   :  { %477 = vmatpush.msrb.mxu2 %v2579_v1  ;;  %521 = vmatpush.msrb.mxu3 %v2632_v58  ;;  %v2742_v19 = vld [vmem:[%s4332_s7 + $0x138] sm:$0xff]  ;;  %v2754_v21 = vld [vmem:[%s4332_s7 + $0xd0] sm:$0xff]  ;;  %v2909_v43 = vld [vmem:[%s4332_s7 + $0xa8] sm:$0xff] }
  0xb0   :  { %285 = vmatpush.bf16.msra.mxu0 %v209_v41  ;;  %314 = vmatpush.bf16.msra.mxu1 %v210_v42  ;;  %v2856_v35 = vld [vmem:[%s4332_s7 + $0x198] sm:$0xff]  ;;  %v2868_v22 = vld [vmem:[%s4332_s7 + $0x190] sm:$0xff]  ;;  %v2897_v41 = vld [vmem:[%s4332_s7 + $0x188] sm:$0xff] }
  0xb1   :  { %478 = vmatpush.msrb.mxu2 %v2584_v4  ;;  %522 = vmatpush.msrb.mxu3 %v2666_v3  ;;  %v2880_v28 = vld [vmem:[%s4332_s7 + $0x30] sm:$0xff]  ;;  %v2904_v42 = vld [vmem:[%s4332_s7 + $0x28] sm:$0xff]  ;;  %v2914_v44 = vld [vmem:[%s4332_s7 + $0x180] sm:$0xff] }
  0xb2   :  { %v2885_v39 = vld [vmem:[%s4332_s7 + $0xb0] sm:$0xff] }
  0xb3   :  { %479 = vmatpush.msrb.mxu2 %v2603_v53  ;;  %523 = vmatpush.msrb.mxu3 %v2690_v8 }
  0xb4   :  { %286 = vmatpush.bf16.msra.mxu0 %v205_v46  ;;  %315 = vmatpush.bf16.msra.mxu1 %v206_v47  ;;  %v2926_v46 = vld [vmem:[%s4332_s7 + $0xa0] sm:$0xff]  ;;  %v2932_v47 = vld [vmem:[%s4332_s7 + $0x18] sm:$0xff] }
  0xb5   :  { %2090 = vmatmul.msk.bf16.gmra.mxu2 %vm253_vm9, %v2142_v45  ;;  %524 = vmatpush.msrb.mxu3 %v2719_v14 }
  0xb6   :  { %480 = vmatpush.msrb.mxu2 %v2620_v56 }
  0xb7   :  { %2081 = vmatmul.msk.bf16.vlgmr.msra.gmra.mxu0 %vm253_vm9, %v2141_v29  ;;  %2085 = vmatmul.msk.bf16.vlgmr.msra.gmra.mxu1 %vm253_vm9, %v2141_v29  ;;  %v2793_v29 = vld [vmem:[%s4332_s7 + $0x40] sm:$0xff] }
  0xb8   :  { %2094 = vmatmul.msk.bf16.gmra.mxu3 %vm253_vm9, %v2142_v45  ;;  %395 = vmatpush.msrb.mxu0 %v2614_v55 }
  0xb9   :  { %436 = vmatpush.msrb.mxu1 %v2626_v57  ;;  %481 = vmatpush.msrb.mxu2 %v2649_v61 }
  0xba   :  { %396 = vmatpush.msrb.mxu0 %v2638_v59  ;;  %525 = vmatpush.msrb.mxu3 %v2748_v20 }
  0xbb   :  { %437 = vmatpush.msrb.mxu1 %v2643_v60  ;;  %482 = vmatpush.msrb.mxu2 %v2678_v6 }
  0xbc   :  { %397 = vmatpush.msrb.mxu0 %v2655_v62  ;;  %526 = vmatpush.msrb.mxu3 %v2776_v25 }
  0xbd   :  { %438 = vmatpush.msrb.mxu1 %v2660_v63  ;;  %483 = vmatpush.msrb.mxu2 %v2707_v12 }
  0xbe   :  { %398 = vmatpush.msrb.mxu0 %v2672_v5  ;;  %527 = vmatpush.msrb.mxu3 %v2799_v30 }
  0xbf   :  { %439 = vmatpush.msrb.mxu1 %v2684_v7  ;;  %484 = vmatpush.msrb.mxu2 %v2726_v15 }
  0xc0   :  { %399 = vmatpush.msrb.mxu0 %v2696_v9  ;;  %528 = vmatpush.msrb.mxu3 %v2823_v0 }
  0xc1   :  { %440 = vmatpush.msrb.mxu1 %v2713_v13  ;;  %485 = vmatpush.msrb.mxu2 %v2742_v19 }
  0xc2   :  { %400 = vmatpush.msrb.mxu0 %v2732_v18  ;;  %529 = vmatpush.msrb.mxu3 %v2842_v37 }
  0xc3   :  { %441 = vmatpush.msrb.mxu1 %v2754_v21  ;;  %486 = vmatpush.msrb.mxu2 %v2763_v23 }
  0xc4   :  { %401 = vmatpush.msrb.mxu0 %v2768_v24  ;;  %530 = vmatpush.msrb.mxu3 %v2856_v35 }
  0xc5   :  { %2091 = vmatmul.msk.bf16.gmra.mxu2 %vm253_vm9, %v2570_v50  ;;  %442 = vmatpush.msrb.mxu1 %v2781_v26 }
  0xc6   :  { %487 = vmatpush.msrb.mxu2 %v2787_v27  ;;  %402 = vmatpush.msrb.mxu0 %v2793_v29 }
  0xc7   :  { %2082 = vmatmul.msk.bf16.gmra.mxu0 %vm253_vm9, %v2142_v45  ;;  %2086 = vmatmul.msk.bf16.gmra.mxu1 %vm253_vm9, %v2142_v45  ;;  %v2921_v45 = vld [vmem:[%s4332_s7 + $0x20] sm:$0xff] }
  0xc8   :  { %2095 = vmatmul.msk.bf16.gmra.mxu3 %vm253_vm9, %v2570_v50  ;;  %443 = vmatpush.msrb.mxu1 %v2805_v31 }
  0xc9   :  { %488 = vmatpush.msrb.mxu2 %v2811_v33  ;;  %403 = vmatpush.msrb.mxu0 %v2817_v34 }
  0xca   :  { %444 = vmatpush.msrb.mxu1 %v2829_v2  ;;  %531 = vmatpush.msrb.mxu3 %v2868_v22 }
  0xcb   :  { %489 = vmatpush.msrb.mxu2 %v2835_v36  ;;  %404 = vmatpush.msrb.mxu0 %v2880_v28 }
  0xcc   :  { %445 = vmatpush.msrb.mxu1 %v2885_v39  ;;  %532 = vmatpush.msrb.mxu3 %v2897_v41 }
  0xcd   :  { %490 = vmatpush.msrb.mxu2 %v2849_v32  ;;  %405 = vmatpush.msrb.mxu0 %v2904_v42 }
  0xce   :  { %446 = vmatpush.msrb.mxu1 %v2909_v43  ;;  %533 = vmatpush.msrb.mxu3 %v2914_v44 }
  0xcf   :  { %491 = vmatpush.msrb.mxu2 %v2862_v38  ;;  %406 = vmatpush.msrb.mxu0 %v2921_v45 }
  0xd0   :  { %447 = vmatpush.msrb.mxu1 %v2926_v46  ;;  %714 = vmatpush.msra.mxu3 %v2589_v51  ;;  %v2968_v51 = vld [vmem:[%s4332_s7 + $0x88] sm:$0xff] }
  0xd1   :  { %492 = vmatpush.msrb.mxu2 %v2890_v40  ;;  %407 = vmatpush.msrb.mxu0 %v2932_v47 }
  0xd2   :  { %715 = vmatpush.msra.mxu3 %v2597_v52  ;;  %v2977_v52 = vld [vmem:[%s4332_s7] sm:$0xff] }
  0xd3   :  { %673 = vmatpush.msra.mxu2 %v2579_v1  ;;  %v2954_v1 = vld [vmem:[%s4332_s7 + $0x90] sm:$0xff] }
  0xd4   :  { %716 = vmatpush.msra.mxu3 %v2609_v54 }
  0xd5   :  { %2092 = vmatmul.msk.bf16.gmra.mxu2 %vm253_vm9, %v2701_v10 }
  0xd6   :  { %674 = vmatpush.msra.mxu2 %v2584_v4  ;;  %v2963_v4 = vld [vmem:[%s4332_s7 + $0x8] sm:$0xff]  ;;  %717 = vmatpush.msra.mxu3 %v2632_v58 }
  0xd7   :  { %2083 = vmatmul.msk.bf16.gmra.mxu0 %vm253_vm9, %v2570_v50  ;;  %2087 = vmatmul.msk.bf16.gmra.mxu1 %vm253_vm9, %v2570_v50  ;;  %v2937_v50 = vld [vmem:[%s4332_s7 + $0x98] sm:$0xff] }
  0xd8   :  { %2096 = vmatmul.msk.bf16.gmra.mxu3 %vm253_vm9, %v2701_v10  ;;  %448 = vmatpush.msrb.mxu1 %v2937_v50 }
  0xd9   :  { %675 = vmatpush.msra.mxu2 %v2603_v53  ;;  %v2982_v53 = vld [vmem:[%s4332_s7 + $0x80] sm:$0xff]  ;;  %718 = vmatpush.msra.mxu3 %v2666_v3 }
  0xda   :  { %449 = vmatpush.msrb.mxu1 %v2954_v1 }
  0xdb   :  { %676 = vmatpush.msra.mxu2 %v2620_v56  ;;  %719 = vmatpush.msra.mxu3 %v2690_v8 }
  0xdc   :  { %450 = vmatpush.msrb.mxu1 %v2968_v51 }
  0xdd   :  { %677 = vmatpush.msra.mxu2 %v2649_v61  ;;  %720 = vmatpush.msra.mxu3 %v2719_v14 }
  0xde   :  { %451 = vmatpush.msrb.mxu1 %v2982_v53 }
  0xdf   :  { %678 = vmatpush.msra.mxu2 %v2678_v6  ;;  %721 = vmatpush.msra.mxu3 %v2748_v20 }
  0xe0   :  { %632 = vmatpush.msra.mxu1 %v2626_v57 }
  0xe1   :  { %679 = vmatpush.msra.mxu2 %v2707_v12  ;;  %722 = vmatpush.msra.mxu3 %v2776_v25 }
  0xe2   :  { %633 = vmatpush.msra.mxu1 %v2643_v60 }
  0xe3   :  { %680 = vmatpush.msra.mxu2 %v2726_v15  ;;  %723 = vmatpush.msra.mxu3 %v2799_v30 }
  0xe4   :  { %634 = vmatpush.msra.mxu1 %v2660_v63 }
  0xe5   :  { %681 = vmatpush.msra.mxu2 %v2742_v19  ;;  %724 = vmatpush.msra.mxu3 %v2823_v0 }
  0xe6   :  { %635 = vmatpush.msra.mxu1 %v2684_v7 }
  0xe7   :  { %2084 = vmatmul.msk.bf16.gmra.mxu0 %vm253_vm9, %v2701_v10  ;;  %2088 = vmatmul.msk.bf16.gmra.mxu1 %vm253_vm9, %v2701_v10  ;;  %v2949_v10 = vld [vmem:[%s4332_s7 + $0x10] sm:$0xff] }
  0xe8   :  { %408 = vmatpush.msrb.mxu0 %v2949_v10  ;;  %682 = vmatpush.msra.mxu2 %v2763_v23 }
  0xe9   :  { %636 = vmatpush.msra.mxu1 %v2713_v13  ;;  %725 = vmatpush.msra.mxu3 %v2842_v37 }
  0xea   :  { %409 = vmatpush.msrb.mxu0 %v2963_v4  ;;  %683 = vmatpush.msra.mxu2 %v2787_v27 }
  0xeb   :  { %637 = vmatpush.msra.mxu1 %v2754_v21  ;;  %726 = vmatpush.msra.mxu3 %v2856_v35 }
  0xec   :  { %410 = vmatpush.msrb.mxu0 %v2977_v52  ;;  %684 = vmatpush.msra.mxu2 %v2811_v33 }
  0xed   :  { %638 = vmatpush.msra.mxu1 %v2781_v26  ;;  %727 = vmatpush.msra.mxu3 %v2868_v22 }
  0xee   :  { %591 = vmatpush.msra.mxu0 %v2614_v55  ;;  %685 = vmatpush.msra.mxu2 %v2835_v36 }
  0xef   :  { %639 = vmatpush.msra.mxu1 %v2805_v31  ;;  %728 = vmatpush.msra.mxu3 %v2897_v41 }
  0xf0   :  { %592 = vmatpush.msra.mxu0 %v2638_v59  ;;  %686 = vmatpush.msra.mxu2 %v2849_v32 }
  0xf1   :  { %640 = vmatpush.msra.mxu1 %v2829_v2  ;;  %729 = vmatpush.msra.mxu3 %v2914_v44 }
  0xf2   :  { %593 = vmatpush.msra.mxu0 %v2655_v62  ;;  %687 = vmatpush.msra.mxu2 %v2862_v38 }
  0xf3   :  { %641 = vmatpush.msra.mxu1 %v2885_v39 }
  0xf4   :  { %594 = vmatpush.msra.mxu0 %v2672_v5  ;;  %688 = vmatpush.msra.mxu2 %v2890_v40 }
  0xf5   :  { %642 = vmatpush.msra.mxu1 %v2909_v43 }
  0xf6   :  { %595 = vmatpush.msra.mxu0 %v2696_v9 }
  0xf7   :  { %643 = vmatpush.msra.mxu1 %v2926_v46 }
  0xf8   :  { %596 = vmatpush.msra.mxu0 %v2732_v18 }
  0xf9   :  { %644 = vmatpush.msra.mxu1 %v2937_v50 }
  0xfa   :  { %597 = vmatpush.msra.mxu0 %v2768_v24 }
  0xfb   :  { %645 = vmatpush.msra.mxu1 %v2954_v1 }
  0xfc   :  { %598 = vmatpush.msra.mxu0 %v2793_v29 }
  0xfd   :  { %646 = vmatpush.msra.mxu1 %v2968_v51 }
  0xfe   :  { %599 = vmatpush.msra.mxu0 %v2817_v34 }
  0xff   :  { %647 = vmatpush.msra.mxu1 %v2982_v53 }
 0x100   :  { %600 = vmatpush.msra.mxu0 %v2880_v28 }
 0x102   :  { %601 = vmatpush.msra.mxu0 %v2904_v42 }
 0x104   :  { %602 = vmatpush.msra.mxu0 %v2921_v45 }
 0x106   :  { %603 = vmatpush.msra.mxu0 %v2932_v47 }
 0x108   :  { %604 = vmatpush.msra.mxu0 %v2949_v10 }
 0x10a   :  { %605 = vmatpush.msra.mxu0 %v2963_v4 }
 0x10c   :  { %606 = vmatpush.msra.mxu0 %v2977_v52 }
 0x128   :  { %v3024_v54 = vpop.f32.mrf.mxu2 }
 0x129   :  { %4370 = vst [vmem:[#allocation10_spill] sm:$0xff] %v3024_v54  ;;  %493 = vmatmul.f32.vlgmr.msrb.gmra.mxu2 %v3024_v54  ;;  %v561_v30 = vmul.f32 %v3024_v54, %v3024_v54 }
 0x12a   :  { %v3030_v55 = vpop.f32.mrf.mxu3 }
 0x12b   :  { %4371 = vst [vmem:[#allocation11_spill] sm:$0xff] %v3030_v55  ;;  %534 = vmatmul.f32.vlgmr.msrb.gmra.mxu3 %v3030_v55  ;;  %v562_v31 = vmul.f32 %v3030_v55, %v3030_v55 }
 0x130   :  { %v3042_v56 = vpop.f32.mrf.mxu2 }
 0x131   :  { %4372 = vst [vmem:[#allocation12_spill] sm:$0xff] %v3042_v56  ;;  %496 = vmatmul.f32.gmra.mxu2 %v3042_v56  ;;  %v565_v0 = vmul.f32 %v3042_v56, %v3042_v56 }
 0x132   :  { %v3047_v57 = vpop.f32.mrf.mxu3 }
 0x133   :  { %4373 = vst [vmem:[#allocation13_spill] sm:$0xff] %v3047_v57  ;;  %537 = vmatmul.f32.gmra.mxu3 %v3047_v57  ;;  %v566_v2 = vmul.f32 %v3047_v57, %v3047_v57 }
 0x134   :  { %v3052_v58 = vpop.f32.mrf.mxu0  ;;  %v3054_v59 = vpop.f32.mrf.mxu1 }
 0x135   :  { %4374 = vst [vmem:[#allocation14_spill] sm:$0xff] %v3052_v58  ;;  %411 = vmatmul.f32.vlgmr.msrb.gmra.mxu0 %v3052_v58  ;;  %452 = vmatmul.f32.vlgmr.msrb.gmra.mxu1 %v3054_v59  ;;  %v559_v36 = vmul.f32 %v3052_v58, %v3052_v58  ;;  %v560_v37 = vmul.f32 %v3054_v59, %v3054_v59 }
 0x136   :  { %4375 = vst [vmem:[#allocation15_spill] sm:$0xff] %v3054_v59 }
 0x138   :  { %v3061_v60 = vpop.f32.mrf.mxu2 }
 0x139   :  { %499 = vmatmul.f32.gmra.mxu2 %v3061_v60  ;;  %v569_v32 = vmul.f32 %v3061_v60, %v3061_v60 }
 0x13b   :  { %v3064_v61 = vpop.f32.mrf.mxu3 }
 0x13c   :  { %540 = vmatmul.f32.gmra.mxu3 %v3064_v61  ;;  %v3067_v62 = vpop.f32.mrf.mxu0  ;;  %v3069_v63 = vpop.f32.mrf.mxu1  ;;  %v570_v35 = vmul.f32 %v3064_v61, %v3064_v61 }
 0x13d   :  { %4376 = vst [vmem:[#allocation16_spill] sm:$0xff] %v3067_v62  ;;  %414 = vmatmul.f32.gmra.mxu0 %v3067_v62  ;;  %455 = vmatmul.f32.gmra.mxu1 %v3069_v63  ;;  %v563_v38 = vmul.f32 %v3067_v62, %v3067_v62  ;;  %v564_v22 = vmul.f32 %v3069_v63, %v3069_v63 }
 0x13e   :  { %4377 = vst [vmem:[#allocation17_spill] sm:$0xff] %v3069_v63 }
 0x140   :  { %v3073_v3 = vpop.f32.mrf.mxu2 }
 0x141   :  { %4378 = vst [vmem:[#allocation18_spill] sm:$0xff] %v3073_v3  ;;  %502 = vmatmul.f32.gmra.mxu2 %v3073_v3  ;;  %v573_v28 = vmul.f32 %v3073_v3, %v3073_v3 }
 0x143   :  { %v3076_v5 = vpop.f32.mrf.mxu3 }
 0x144   :  { %4379 = vst [vmem:[#allocation19_spill] sm:$0xff] %v3076_v5  ;;  %543 = vmatmul.f32.gmra.mxu3 %v3076_v5  ;;  %v3079_v6 = vpop.f32.mrf.mxu0  ;;  %v3081_v7 = vpop.f32.mrf.mxu1  ;;  %v574_v39 = vmul.f32 %v3076_v5, %v3076_v5 }
 0x145   :  { %417 = vmatmul.f32.gmra.mxu0 %v3079_v6  ;;  %458 = vmatmul.f32.gmra.mxu1 %v3081_v7  ;;  %v567_v40 = vmul.f32 %v3079_v6, %v3079_v6  ;;  %v568_v41 = vmul.f32 %v3081_v7, %v3081_v7 }
 0x148   :  { %v3085_v8 = vpop.f32.mrf.mxu2 }
 0x149   :  { %505 = vmatmul.f32.gmra.mxu2 %v3085_v8  ;;  %v577_v42 = vmul.f32 %v3085_v8, %v3085_v8 }
 0x14b   :  { %v3088_v9 = vpop.f32.mrf.mxu3 }
 0x14c   :  { %546 = vmatmul.f32.gmra.mxu3 %v3088_v9  ;;  %v3091_v12 = vpop.f32.mrf.mxu0  ;;  %v3093_v13 = vpop.f32.mrf.mxu1  ;;  %v578_v43 = vmul.f32 %v3088_v9, %v3088_v9 }
 0x14d   :  { %4380 = vst [vmem:[#allocation20_spill] sm:$0xff] %v3091_v12  ;;  %420 = vmatmul.f32.gmra.mxu0 %v3091_v12  ;;  %461 = vmatmul.f32.gmra.mxu1 %v3093_v13  ;;  %v571_v44 = vmul.f32 %v3091_v12, %v3091_v12  ;;  %v572_v45 = vmul.f32 %v3093_v13, %v3093_v13 }
 0x14e   :  { %4381 = vst [vmem:[#allocation21_spill] sm:$0xff] %v3093_v13 }
 0x150   :  { %v3097_v14 = vpop.f32.mrf.mxu2 }
 0x151   :  { %508 = vmatmul.f32.gmra.mxu2 %v3097_v14  ;;  %v581_v46 = vmul.f32 %v3097_v14, %v3097_v14 }
 0x153   :  { %v3100_v15 = vpop.f32.mrf.mxu3 }
 0x154   :  { %549 = vmatmul.f32.gmra.mxu3 %v3100_v15  ;;  %v3103_v18 = vpop.f32.mrf.mxu0  ;;  %v3105_v19 = vpop.f32.mrf.mxu1  ;;  %v582_v47 = vmul.f32 %v3100_v15, %v3100_v15 }
 0x155   :  { %423 = vmatmul.f32.gmra.mxu0 %v3103_v18  ;;  %464 = vmatmul.f32.gmra.mxu1 %v3105_v19  ;;  %v575_v50 = vmul.f32 %v3103_v18, %v3103_v18  ;;  %v576_v10 = vmul.f32 %v3105_v19, %v3105_v19 }
 0x158   :  { %v3109_v20 = vpop.f32.mrf.mxu2 }
 0x159   :  { %4382 = vst [vmem:[#allocation22_spill] sm:$0xff] %v3109_v20  ;;  %511 = vmatmul.f32.gmra.mxu2 %v3109_v20  ;;  %v585_v1 = vmul.f32 %v3109_v20, %v3109_v20 }
 0x15b   :  { %v3112_v21 = vpop.f32.mrf.mxu3 }
 0x15c   :  { %4383 = vst [vmem:[#allocation23_spill] sm:$0xff] %v3112_v21  ;;  %552 = vmatmul.f32.gmra.mxu3 %v3112_v21  ;;  %v3115_v23 = vpop.f32.mrf.mxu0  ;;  %v3117_v24 = vpop.f32.mrf.mxu1  ;;  %v586_v4 = vmul.f32 %v3112_v21, %v3112_v21 }
 0x15d   :  { %426 = vmatmul.f32.gmra.mxu0 %v3115_v23  ;;  %467 = vmatmul.f32.gmra.mxu1 %v3117_v24  ;;  %v579_v51 = vmul.f32 %v3115_v23, %v3115_v23  ;;  %v580_v52 = vmul.f32 %v3117_v24, %v3117_v24 }
 0x160   :  { %v3121_v25 = vpop.f32.mrf.mxu2 }
 0x161   :  { %4384 = vst [vmem:[#allocation24_spill] sm:$0xff] %v3121_v25  ;;  %514 = vmatmul.f32.gmra.mxu2 %v3121_v25  ;;  %v589_v53 = vmul.f32 %v3121_v25, %v3121_v25 }
 0x163   :  { %v3124_v26 = vpop.f32.mrf.mxu3 }
 0x164   :  { %4385 = vst [vmem:[#allocation25_spill] sm:$0xff] %v3124_v26  ;;  %555 = vmatmul.f32.gmra.mxu3 %v3124_v26  ;;  %v3127_v27 = vpop.f32.mrf.mxu0  ;;  %v3129_v29 = vpop.f32.mrf.mxu1 }
 0x165   :  { %4386 = vst [vmem:[#allocation26_spill] sm:$0xff] %v3127_v27  ;;  %429 = vmatmul.f32.gmra.mxu0 %v3127_v27  ;;  %470 = vmatmul.f32.gmra.mxu1 %v3129_v29 }
 0x166   :  { %4387 = vst [vmem:[#allocation27_spill] sm:$0xff] %v3129_v29 }
 0x169   :  { %689 = vmatmul.f32.vlgmr.msra.gmra.mxu2 %v561_v30  ;;  %v590_v30 = vmul.f32 %v3124_v26, %v3124_v26 }
 0x16c   :  { %730 = vmatmul.f32.vlgmr.msra.gmra.mxu3 %v562_v31  ;;  %v3137_v33 = vpop.f32.mrf.mxu0  ;;  %v3139_v34 = vpop.f32.mrf.mxu1  ;;  %v583_v31 = vmul.f32 %v3127_v27, %v3127_v27  ;;  %v2320_v27 = vmov 0  }
 0x16d   :  { %4388 = vst [vmem:[#allocation28_spill] sm:$0xff] %v3137_v33  ;;  %432 = vmatmul.f32.gmra.mxu0 %v3137_v33  ;;  %473 = vmatmul.f32.gmra.mxu1 %v3139_v34 }
 0x16e   :  { %4389 = vst [vmem:[#allocation29_spill] sm:$0xff] %v3139_v34  ;;  %2201 = vset.pattern.permute.xlu2 %v2320_v27  ;;  %2202 = vset.pattern.permute.xlu0 %v2320_v27 }
 0x16f   :  { %2203 = vset.pattern.permute.xlu1 %v2320_v27 }
 0x171   :  { %692 = vmatmul.f32.gmra.mxu2 %v565_v0  ;;  %v584_v0 = vmul.f32 %v3129_v29, %v3129_v29 }
 0x174   :  { %733 = vmatmul.f32.gmra.mxu3 %v566_v2  ;;  %v587_v2 = vmul.f32 %v3137_v33, %v3137_v33 }
 0x175   :  { %607 = vmatmul.f32.vlgmr.msra.gmra.mxu0 %v559_v36  ;;  %648 = vmatmul.f32.vlgmr.msra.gmra.mxu1 %v560_v37  ;;  %v588_v36 = vmul.f32 %v3139_v34, %v3139_v34 }
 0x179   :  { %695 = vmatmul.f32.gmra.mxu2 %v569_v32 }
 0x17c   :  { %736 = vmatmul.f32.gmra.mxu3 %v570_v35 }
 0x17d   :  { %610 = vmatmul.f32.gmra.mxu0 %v563_v38  ;;  %651 = vmatmul.f32.gmra.mxu1 %v564_v22 }
 0x181   :  { %698 = vmatmul.f32.gmra.mxu2 %v573_v28 }
 0x184   :  { %739 = vmatmul.f32.gmra.mxu3 %v574_v39 }
 0x185   :  { %613 = vmatmul.f32.gmra.mxu0 %v567_v40  ;;  %654 = vmatmul.f32.gmra.mxu1 %v568_v41 }
 0x189   :  { %701 = vmatmul.f32.gmra.mxu2 %v577_v42 }
 0x18c   :  { %742 = vmatmul.f32.gmra.mxu3 %v578_v43 }
 0x18d   :  { %616 = vmatmul.f32.gmra.mxu0 %v571_v44  ;;  %657 = vmatmul.f32.gmra.mxu1 %v572_v45 }
 0x191   :  { %704 = vmatmul.f32.gmra.mxu2 %v581_v46 }
 0x194   :  { %745 = vmatmul.f32.gmra.mxu3 %v582_v47 }
 0x195   :  { %619 = vmatmul.f32.gmra.mxu0 %v575_v50  ;;  %660 = vmatmul.f32.gmra.mxu1 %v576_v10 }
 0x199   :  { %707 = vmatmul.f32.gmra.mxu2 %v585_v1 }
 0x19c   :  { %748 = vmatmul.f32.gmra.mxu3 %v586_v4 }
 0x19d   :  { %622 = vmatmul.f32.gmra.mxu0 %v579_v51  ;;  %663 = vmatmul.f32.gmra.mxu1 %v580_v52 }
 0x1a1   :  { %710 = vmatmul.f32.gmra.mxu2 %v589_v53 }
 0x1a4   :  { %751 = vmatmul.f32.gmra.mxu3 %v590_v30 }
 0x1a5   :  { %625 = vmatmul.f32.gmra.mxu0 %v583_v31  ;;  %666 = vmatmul.f32.gmra.mxu1 %v584_v0 }
 0x1ac   :  { %v494_v37 = vpop.f32.mrf.mxu2 }
 0x1ad   :  { %628 = vmatmul.f32.gmra.mxu0 %v587_v2  ;;  %669 = vmatmul.f32.gmra.mxu1 %v588_v36 }
 0x1ae   :  { %v535_v32 = vpop.f32.mrf.mxu3 }
 0x1b2   :  { %v412_v35 = vpop.f32.mrf.mxu0  ;;  %v453_v38 = vpop.f32.mrf.mxu1 }
 0x1b3   :  { %v454_v22 = vadd.f32 %v453_v38, %v412_v35 }
 0x1b4   :  { %v3203_v28 = vpop.f32.mrf.mxu2 }
 0x1b5   :  { %v495_v39 = vadd.f32 %v494_v37, %v454_v22 }
 0x1b6   :  { %v3205_v40 = vpop.f32.mrf.mxu3 }
 0x1b7   :  { %v536_v41 = vadd.f32 %v535_v32, %v495_v39 }
 0x1b9   :  { %v3241_v62 = vmul.f32 0.0025510204, %v536_v41 }
 0x1ba   :  { %v3207_v42 = vpop.f32.mrf.mxu0  ;;  %v3209_v43 = vpop.f32.mrf.mxu1 }
 0x1bb   :  { %v771_v58 = vmul.f32 %v3241_v62, %v3241_v62 }
 0x1bc   :  { %v500_v44 = vpop.f32.mrf.mxu2 }
 0x1bf   :  { %v541_v45 = vpop.f32.mrf.mxu3 }
 0x1c2   :  { %v418_v46 = vpop.f32.mrf.mxu0  ;;  %v459_v47 = vpop.f32.mrf.mxu1 }
 0x1c3   :  { %v460_v26 = vadd.f32 %v459_v47, %v418_v46 }
 0x1c4   :  { %v503_v50 = vpop.f32.mrf.mxu2 }
 0x1c7   :  { %v544_v10 = vpop.f32.mrf.mxu3 }
 0x1ca   :  { %v421_v1 = vpop.f32.mrf.mxu0  ;;  %v462_v4 = vpop.f32.mrf.mxu1 }
 0x1cc   :  { %v3211_v51 = vpop.f32.mrf.mxu2 }
 0x1cf   :  { %v3213_v52 = vpop.f32.mrf.mxu3 }
 0x1d2   :  { %v424_v53 = vpop.f32.mrf.mxu0  ;;  %v465_v30 = vpop.f32.mrf.mxu1 }
 0x1d4   :  { %v3215_v31 = vpop.f32.mrf.mxu2 }
 0x1d7   :  { %v3217_v0 = vpop.f32.mrf.mxu3 }
 0x1da   :  { %v3219_v2 = vpop.f32.mrf.mxu0  ;;  %v3221_v36 = vpop.f32.mrf.mxu1 }
 0x1dc   :  { %v3223_v37 = vpop.f32.mrf.mxu2 }
 0x1df   :  { %v3225_v32 = vpop.f32.mrf.mxu3 }
 0x1e2   :  { %v3227_v35 = vpop.f32.mrf.mxu0  ;;  %v3229_v38 = vpop.f32.mrf.mxu1 }
 0x1e4   :  { %v3231_v22 = vpop.f32.mrf.mxu2 }
 0x1e7   :  { %v3233_v39 = vpop.f32.mrf.mxu3 }
 0x1ea   :  { %v3235_v17 = vpop.f32.mrf.mxu0  ;;  %v3237_v16 = vpop.f32.mrf.mxu1 }
 0x1ec   :  { %v690_v48 = vpop.f32.mrf.mxu2 }
 0x1ef   :  { %v731_v49 = vpop.f32.mrf.mxu3 }
 0x1f2   :  { %v608_v11 = vpop.f32.mrf.mxu0  ;;  %v649_v57 = vpop.f32.mrf.mxu1 }
 0x1f3   :  { %v650_v56 = vadd.f32 %v649_v57, %v608_v11  ;;  %v501_v11 = vadd.f32 %v500_v44, %v460_v26 }
 0x1f4   :  { %v3239_v63 = vpop.f32.mrf.mxu2 }
 0x1f5   :  { %v691_v55 = vadd.f32 %v690_v48, %v650_v56  ;;  %v542_v29 = vadd.f32 %v541_v45, %v501_v11  ;;  %v463_v48 = vadd.f32 %v462_v4, %v421_v1  ;;  %v466_v4 = vadd.f32 %v465_v30, %v424_v53 }
 0x1f7   :  { %v732_v54 = vadd.f32 %v731_v49, %v691_v55  ;;  %v3243_v59 = vpop.f32.mrf.mxu3  ;;  %v3251_v47 = vmul.f32 0.0025510204, %v542_v29  ;;  %v504_v5 = vadd.f32 %v503_v50, %v463_v48 }
 0x1f9   :  { %v763_v25 = vmul.f32 0.0025510204, %v732_v54  ;;  %v773_v45 = vmul.f32 %v3251_v47, %v3251_v47  ;;  %v545_v1 = vadd.f32 %v544_v10, %v504_v5  ;;  %v787_v5 = vld [vmem:[%s4328_s3] sm:$0xff] }
 0x1fa   :  { %v3247_v34 = vpop.f32.mrf.mxu0  ;;  %v3249_v33 = vpop.f32.mrf.mxu1 }
 0x1fb   :  { %v779_v21 = vsub.f32 %v763_v25, %v771_v58  ;;  %v3255_v29 = vmul.f32 0.0025510204, %v545_v1  ;;  %v457_v1 = vadd.f32 %v3209_v43, %v3207_v42 }
 0x1fc   :  { %v696_v20 = vpop.f32.mrf.mxu2 }
 0x1fd   :  { %v795_v57 = vadd.f32 1e-05, %v779_v21 }
 0x1ff   :  { %2204 = vrsqrt.f32 %v795_v57  ;;  %v737_v41 = vpop.f32.mrf.mxu3  ;;  %vm809_vm11 = vweird.f32 %v795_v57 }
 0x202   :  { %v614_v49 = vpop.f32.mrf.mxu0  ;;  %v655_v55 = vpop.f32.mrf.mxu1 }
 0x203   :  { %v656_v56 = vadd.f32 %v655_v55, %v614_v49 }
 0x204   :  { %v699_v46 = vpop.f32.mrf.mxu2 }
 0x205   :  { %v2205_v54 = vpop.eup %2204  ;;  %v697_v58 = vadd.f32 %v696_v20, %v656_v56  ;;  %v507_v20 = vadd.f32 %v3211_v51, %v466_v4  ;;  %v774_v51 = vmul.f32 %v3255_v29, %v3255_v29 }
 0x206   :  { %v804_v25 = vmul.f32 %v2205_v54, %v795_v57  ;;  %vm810_vm10 = vweird.f32 %v2205_v54 }
 0x207   :  { %v738_v26 = vadd.f32 %v737_v41, %v697_v58  ;;  %v740_v21 = vpop.f32.mrf.mxu3  ;;  %vm811_vm12 = vmor %vm809_vm11, %vm810_vm10 }
 0x208   :  { %v805_v44 = vmul.f32 %v2205_v54, %v804_v25 }
 0x209   :  { %v765_v11 = vmul.f32 0.0025510204, %v738_v26 }
 0x20a   :  { %v617_v49 = vpop.f32.mrf.mxu0  ;;  %v658_v55 = vpop.f32.mrf.mxu1  ;;  %v806_v3 = vmul.f32 0.5, %v805_v44 }
 0x20b   :  { %v781_v13 = vsub.f32 %v765_v11, %v773_v45  ;;  %v659_v27 = vadd.f32 %v658_v55, %v617_v49 }
 0x20c   :  { %v807_v12 = vsub.f32 1.5, %v806_v3  ;;  %v702_v48 = vpop.f32.mrf.mxu2  ;;  %v469_v3 = vadd.f32 %v3221_v36, %v3219_v2 }
 0x20d   :  { %v797_v50 = vadd.f32 1e-05, %v781_v13  ;;  %v700_v41 = vadd.f32 %v699_v46, %v659_v27  ;;  %v548_v13 = vadd.f32 %v3213_v52, %v507_v20  ;;  %v653_v27 = vadd.f32 %v3249_v33, %v3247_v34 }
 0x20e   :  { %v808_v10 = vmul.f32 %v2205_v54, %v807_v12  ;;  %v510_v44 = vadd.f32 %v3215_v31, %v469_v3 }
 0x20f   :  { %2206 = vrsqrt.f32 %v797_v50  ;;  %v741_v53 = vadd.f32 %v740_v21, %v700_v41  ;;  %v743_v30 = vpop.f32.mrf.mxu3  ;;  %v3273_v36 = vmul.f32 0.0025510204, %v548_v13  ;;  %v694_v3 = vadd.f32 %v3239_v63, %v653_v27 }
 0x210   :  { %v812_v56 = vsel %vm811_vm12, %v2205_v54, %v808_v10  ;;  %v551_v49 = vadd.f32 %v3217_v0, %v510_v44  ;;  %vm829_vm14 = vweird.f32 %v797_v50 }
 0x211   :  { %v766_v46 = vmul.f32 0.0025510204, %v741_v53  ;;  %v3266_v58 = vmul.f32 %v812_v56, %v787_v5  ;;  %v775_v55 = vmul.f32 %v3273_v36, %v3273_v36  ;;  %v498_v5 = vadd.f32 %v3203_v28, %v457_v1  ;;  %v789_v28 = vld [vmem:[%s4328_s3 + $0x10] sm:$0xff] }
 0x212   :  { %v620_v25 = vpop.f32.mrf.mxu0  ;;  %v661_v26 = vpop.f32.mrf.mxu1  ;;  %v3288_v0 = vmul.f32 0.0025510204, %v551_v49 }
 0x213   :  { %v782_v12 = vsub.f32 %v766_v46, %v774_v51  ;;  %v662_v57 = vadd.f32 %v661_v26, %v620_v25  ;;  %v3270_v21 = vmul.f32 %v3266_v58, %v3241_v62  ;;  %v472_v62 = vadd.f32 %v3229_v38, %v3227_v35 }
 0x214   :  { %v705_v11 = vpop.f32.mrf.mxu2  ;;  %v539_v13 = vadd.f32 %v3205_v40, %v498_v5  ;;  %v776_v63 = vmul.f32 %v3288_v0, %v3288_v0 }
 0x215   :  { %v2207_v2 = vpop.eup %2206  ;;  %v3275_v54 = vadd.f32 1e-05, %v782_v12  ;;  %v703_v45 = vadd.f32 %v702_v48, %v662_v57  ;;  %v513_v35 = vadd.f32 %v3223_v37, %v472_v62  ;;  %v475_v12 = vadd.f32 %v3237_v16, %v3235_v17 }
 0x216   :  { %v824_v52 = vmul.f32 %v2207_v2, %v797_v50  ;;  %vm830_vm13 = vweird.f32 %v2207_v2  ;;  %v735_v57 = vadd.f32 %v3243_v59, %v694_v3 }
 0x217   :  { %2208 = vrsqrt.f32 %v3275_v54  ;;  %v744_v4 = vadd.f32 %v743_v30, %v703_v45  ;;  %v746_v41 = vpop.f32.mrf.mxu3  ;;  %vm831_vm15 = vmor %vm829_vm14, %vm830_vm13  ;;  %v554_v46 = vadd.f32 %v3225_v32, %v513_v35  ;;  %v516_v17 = vadd.f32 %v3231_v22, %v475_v12  ;;  %v791_v12 = vld [vmem:[%s4328_s3 + $0x20] sm:$0xff] }
 0x218   :  { %v825_v31 = vmul.f32 %v2207_v2, %v824_v52  ;;  %v764_v59 = vmul.f32 0.0025510204, %v735_v57  ;;  %vm839_vm10 = vweird.f32 %v3275_v54 }
 0x219   :  { %v767_v20 = vmul.f32 0.0025510204, %v744_v4  ;;  %v3308_v4 = vmul.f32 0.0025510204, %v539_v13  ;;  %v3311_v32 = vmul.f32 0.0025510204, %v554_v46 }
 0x21a   :  { %v623_v48 = vpop.f32.mrf.mxu0  ;;  %v664_v42 = vpop.f32.mrf.mxu1  ;;  %v826_v43 = vmul.f32 0.5, %v825_v31 }
 0x21b   :  { %v783_v10 = vsub.f32 %v767_v20, %v775_v55  ;;  %v665_v53 = vadd.f32 %v664_v42, %v623_v48  ;;  %v790_v20 = vld [vmem:[%s4328_s3 + $0x18] sm:$0xff]  ;;  %v772_v48 = vmul.f32 %v3308_v4, %v3308_v4  ;;  %v777_v22 = vmul.f32 %v3311_v32, %v3311_v32 }
 0x21c   :  { %v827_v38 = vsub.f32 1.5, %v826_v43  ;;  %v708_v50 = vpop.f32.mrf.mxu2 }
 0x21d   :  { %v2209_v30 = vpop.eup %2208  ;;  %v3292_v56 = vadd.f32 1e-05, %v783_v10  ;;  %v706_v33 = vadd.f32 %v705_v11, %v665_v53  ;;  %v557_v10 = vadd.f32 %v3233_v39, %v516_v17  ;;  %v780_v53 = vsub.f32 %v764_v59, %v772_v48 }
 0x21e   :  { %v834_v34 = vmul.f32 %v2209_v30, %v3275_v54  ;;  %v828_v51 = vmul.f32 %v2207_v2, %v827_v38  ;;  %vm840_vm9 = vweird.f32 %v2209_v30 }
 0x21f   :  { %2210 = vrsqrt.f32 %v3292_v56  ;;  %v747_v37 = vadd.f32 %v746_v41, %v706_v33  ;;  %vm841_vm11 = vmor %vm839_vm10, %vm840_vm9  ;;  %vm849_vm13 = vweird.f32 %v3292_v56 }
 0x220   :  { %v832_v25 = vsel %vm831_vm15, %v2207_v2, %v828_v51  ;;  %v835_v26 = vmul.f32 %v2209_v30, %v834_v34  ;;  %v749_v2 = vpop.f32.mrf.mxu3 }
 0x221   :  { %v768_v44 = vmul.f32 0.0025510204, %v747_v37  ;;  %v3306_v45 = vmul.f32 %v832_v25, %v789_v28 }
 0x222   :  { %v626_v40 = vpop.f32.mrf.mxu0  ;;  %v667_v52 = vpop.f32.mrf.mxu1  ;;  %v836_v1 = vmul.f32 0.5, %v835_v26 }
 0x223   :  { %v784_v11 = vsub.f32 %v768_v44, %v776_v63  ;;  %v668_v49 = vadd.f32 %v667_v52, %v626_v40  ;;  %927 = vperm.xlu2 %2201, %v3306_v45   ;;  %v3327_v63 = vmul.f32 0.0025510204, %v557_v10 }
 0x224   :  { %v837_v62 = vsub.f32 1.5, %v836_v1  ;;  %v711_v51 = vpop.f32.mrf.mxu2 }
 0x225   :  { %v2211_v16 = vpop.eup %2210  ;;  %v800_v31 = vadd.f32 1e-05, %v784_v11  ;;  %v709_v55 = vadd.f32 %v708_v50, %v668_v49  ;;  %v778_v52 = vmul.f32 %v3327_v63, %v3327_v63  ;;  %v895_v49 = vld [vmem:[%s4329_s4 + $0x20] sm:$0xff] }
 0x226   :  { %v844_v27 = vmul.f32 %v2211_v16, %v3292_v56  ;;  %v838_v41 = vmul.f32 %v2209_v30, %v837_v62  ;;  %vm850_vm12 = vweird.f32 %v2211_v16 }
 0x227   :  { %2212 = vrsqrt.f32 %v800_v31  ;;  %v750_v42 = vadd.f32 %v749_v2, %v709_v55  ;;  %vm851_vm14 = vmor %vm849_vm13, %vm850_vm12  ;;  %vm859_vm9 = vweird.f32 %v800_v31 }
 0x228   :  { %v842_v43 = vsel %vm841_vm11, %v2209_v30, %v838_v41  ;;  %v845_v5 = vmul.f32 %v2211_v16, %v844_v27  ;;  %v3329_v30 = vadd.f32 1e-05, %v780_v53  ;;  %v752_v26 = vpop.f32.mrf.mxu3 }
 0x229   :  { %v769_v35 = vmul.f32 0.0025510204, %v750_v42  ;;  %v3324_v38 = vmul.f32 %v842_v43, %v790_v20  ;;  %v792_v20 = vld [vmem:[%s4328_s3 + $0x28] sm:$0xff] }
 0x22a   :  { %v629_v3 = vpop.f32.mrf.mxu0  ;;  %v670_v33 = vpop.f32.mrf.mxu1  ;;  %v846_v54 = vmul.f32 0.5, %v845_v5  ;;  %v896_v5 = vld [vmem:[%s4329_s4 + $0x28] sm:$0xff] }
 0x22b   :  { %v785_v34 = vsub.f32 %v769_v35, %v777_v22  ;;  %v671_v28 = vadd.f32 %v670_v33, %v629_v3  ;;  %932 = vperm.xlu0 %2202, %v3324_v38  }
 0x22c   :  { %v847_v13 = vsub.f32 1.5, %v846_v54  ;;  %v793_v54 = vld [vmem:[%s4328_s3 + $0x30] sm:$0xff] }
 0x22d   :  { %v2213_v37 = vpop.eup %2212  ;;  %v801_v39 = vadd.f32 1e-05, %v785_v34  ;;  %v712_v46 = vadd.f32 %v711_v51, %v671_v28 }
 0x22e   :  { %v854_v25 = vmul.f32 %v2213_v37, %v800_v31  ;;  %v848_v57 = vmul.f32 %v2211_v16, %v847_v13  ;;  %vm860_vm15 = vweird.f32 %v2213_v37 }
 0x22f   :  { %2214 = vrsqrt.f32 %v801_v39  ;;  %v753_v44 = vadd.f32 %v752_v26, %v712_v46  ;;  %vm861_vm10 = vmor %vm859_vm9, %vm860_vm15  ;;  %vm869_vm12 = vweird.f32 %v801_v39 }
 0x230   :  { %v852_v50 = vsel %vm851_vm14, %v2211_v16, %v848_v57  ;;  %v855_v40 = vmul.f32 %v2213_v37, %v854_v25  ;;  %2216 = vrsqrt.f32 %v3329_v30 }
 0x231   :  { %v770_v1 = vmul.f32 0.0025510204, %v753_v44  ;;  %v887_v11 = vmul.f32 %v852_v50, %v791_v12 }
 0x232   :  { %v856_v2 = vmul.f32 0.5, %v855_v40 }
 0x233   :  { %v786_v62 = vsub.f32 %v770_v1, %v778_v52  ;;  %937 = vperm.xlu1 %2203, %v887_v11   ;;  %v903_v56 = vmul.f32 %v887_v11, %v3273_v36  ;;  %v901_v1 = vmul.f32 %v3306_v45, %v3251_v47  ;;  %v898_v11 = vld [vmem:[%s4329_s4 + $0x38] sm:$0xff]  ;;  %v788_v47 = vld [vmem:[%s4328_s3 + $0x8] sm:$0xff] }
 0x234   :  { %v857_v17 = vsub.f32 1.5, %v856_v2 }
 0x235   :  { %v2215_v16 = vpop.eup %2214  ;;  %v802_v59 = vadd.f32 1e-05, %v786_v62  ;;  %v911_v55 = vsub.f32 %v895_v49, %v903_v56 }
 0x236   :  { %v864_v27 = vmul.f32 %v2215_v16, %v801_v39  ;;  %v858_v41 = vmul.f32 %v2213_v37, %v857_v17  ;;  %v2217_v48 = vpop.eup %2216  ;;  %vm870_vm11 = vweird.f32 %v2215_v16  ;;  %v794_v39 = vld [vmem:[%s4328_s3 + $0x38] sm:$0xff] }
 0x237   :  { %2218 = vrsqrt.f32 %v802_v59  ;;  %1009 = vperm.xlu0 %2202, %v911_v55   ;;  %v814_v36 = vmul.f32 %v2217_v48, %v3329_v30  ;;  %vm871_vm13 = vmor %vm869_vm12, %vm870_vm11  ;;  %vm879_vm15 = vweird.f32 %v802_v59  ;;  %vm819_vm11 = vweird.f32 %v3329_v30  ;;  %v892_v55 = vld [vmem:[%s4329_s4 + $0x8] sm:$0xff] }
 0x238   :  { %v862_v42 = vsel %vm861_vm10, %v2213_v37, %v858_v41  ;;  %v865_v22 = vmul.f32 %v2215_v16, %v864_v27  ;;  %vm820_vm10 = vweird.f32 %v2217_v48 }
 0x239   :  { %v888_v43 = vmul.f32 %v862_v42, %v792_v20  ;;  %v815_v28 = vmul.f32 %v2217_v48, %v814_v36  ;;  %vm821_vm12 = vmor %vm819_vm11, %vm820_vm10 }
 0x23a   :  { %v866_v10 = vmul.f32 0.5, %v865_v22 }
 0x23b   :  { %942 = vperm.xlu2 %2201, %v888_v43   ;;  %v904_v53 = vmul.f32 %v888_v43, %v3288_v0  ;;  %v897_v0 = vld [vmem:[%s4329_s4 + $0x30] sm:$0xff]  ;;  %v816_v25 = vmul.f32 0.5, %v815_v28 }
 0x23c   :  { %v867_v35 = vsub.f32 1.5, %v866_v10  ;;  %v4391_v28 = vld [vmem:[#allocation21_spill] sm:$0xff] }
 0x23d   :  { %v2219_v31 = vpop.eup %2218  ;;  %v912_v3 = vsub.f32 %v896_v5, %v904_v53  ;;  %v817_v50 = vsub.f32 1.5, %v816_v25 }
 0x23e   :  { %v874_v33 = vmul.f32 %v2219_v31, %v802_v59  ;;  %v868_v34 = vmul.f32 %v2215_v16, %v867_v35  ;;  %vm880_vm14 = vweird.f32 %v2219_v31 }
 0x23f   :  { %1014 = vperm.xlu1 %2203, %v912_v3   ;;  %vm881_vm9 = vmor %vm879_vm15, %vm880_vm14  ;;  %v818_v49 = vmul.f32 %v2217_v48, %v817_v50 }
 0x240   :  { %v872_v51 = vsel %vm871_vm13, %v2215_v16, %v868_v34  ;;  %v875_v13 = vmul.f32 %v2219_v31, %v874_v33  ;;  %v902_v16 = vmul.f32 %v3324_v38, %v3255_v29  ;;  %v891_v29 = vld [vmem:[%s4329_s4] sm:$0xff]  ;;  %v4390_v34 = vld [vmem:[#allocation20_spill] sm:$0xff] }
 0x241   :  { %v889_v37 = vmul.f32 %v872_v51, %v793_v54  ;;  %v822_v45 = vsel %vm821_vm12, %v2217_v48, %v818_v49  ;;  %v907_v38 = vsub.f32 %v891_v29, %v3270_v21 }
 0x242   :  { %v876_v46 = vmul.f32 0.5, %v875_v13  ;;  %v884_v17 = vmul.f32 %v822_v45, %v788_v47  ;;  %v4392_v13 = vld [vmem:[#allocation18_spill] sm:$0xff] }
 0x243   :  { %947 = vperm.xlu2 %2201, %v889_v37   ;;  %v905_v26 = vmul.f32 %v889_v37, %v3311_v32  ;;  %v893_v32 = vld [vmem:[%s4329_s4 + $0x10] sm:$0xff]  ;;  %v4393_v37 = vld [vmem:[#allocation19_spill] sm:$0xff] }
 0x244   :  { %v877_v12 = vsub.f32 1.5, %v876_v46  ;;  %v909_v62 = vsub.f32 %v893_v32, %v901_v1  ;;  %v900_v59 = vmul.f32 %v884_v17, %v3308_v4 }
 0x245   :  { %v913_v57 = vsub.f32 %v897_v0, %v905_v26 }
 0x246   :  { %v878_v44 = vmul.f32 %v2219_v31, %v877_v12  ;;  %v908_v27 = vsub.f32 %v892_v55, %v900_v59  ;;  %v4395_v12 = vld [vmem:[#allocation27_spill] sm:$0xff] }
 0x247   :  { %1019 = vperm.xlu1 %2203, %v913_v57  }
 0x248   :  { %v882_v40 = vsel %vm881_vm9, %v2219_v31, %v878_v44 }
 0x249   :  { %v890_v52 = vmul.f32 %v882_v40, %v794_v39 }
 0x24b   :  { %952 = vperm.xlu0 %2202, %v890_v52   ;;  %v906_v2 = vmul.f32 %v890_v52, %v3327_v63  ;;  %v894_v63 = vld [vmem:[%s4329_s4 + $0x18] sm:$0xff] }
 0x24c   :  { %v910_v30 = vsub.f32 %v894_v63, %v902_v16  ;;  %v4396_v52 = vld [vmem:[#allocation22_spill] sm:$0xff] }
 0x24d   :  { %v914_v56 = vsub.f32 %v898_v11, %v906_v2  ;;  %v4397_v2 = vld [vmem:[#allocation23_spill] sm:$0xff] }
 0x24f   :  { %999 = vperm.xlu1 %2203, %v909_v62   ;;  %1024 = vperm.xlu2 %2201, %v914_v56  }
 0x253   :  { %917 = vperm.xlu0 %2202, %v3266_v58  }
 0x257   :  { %922 = vperm.xlu1 %2203, %v884_v17   ;;  %1004 = vperm.xlu2 %2201, %v910_v30  }
 0x25b   :  { %994 = vperm.xlu0 %2202, %v908_v27  }
 0x25f   :  { %989 = vperm.xlu2 %2201, %v907_v38  }
 0x27d   :  { %v928_v20 = vpop.permute.xlu2 %927 }
 0x27e   :  { %v3392_v5 = vmul.f32 %v928_v20, %v3079_v6  ;;  %v3395_v10 = vmul.f32 %v928_v20, %v3081_v7  ;;  %v3400_v3 = vmul.f32 %v928_v20, %v3061_v60  ;;  %v3403_v33 = vmul.f32 %v928_v20, %v3064_v61  ;;  %v4394_v61 = vld [vmem:[#allocation26_spill] sm:$0xff] }
 0x295   :  { %v943_v58 = vpop.permute.xlu2 %942 }
 0x296   :  { %v976_v6 = vmul.f32 %v943_v58, %v3117_v24  ;;  %v978_v7 = vmul.f32 %v943_v58, %v3100_v15 }
 0x29d   :  { %v933_v41 = vpop.permute.xlu0 %932  ;;  %v948_v48 = vpop.permute.xlu2 %947 }
 0x29e   :  { %v968_v51 = vmul.f32 %v933_v41, %v4391_v28  ;;  %v969_v60 = vmul.f32 %v933_v41, %v4392_v13  ;;  %v970_v0 = vmul.f32 %v933_v41, %v4393_v37  ;;  %v979_v46 = vmul.f32 %v948_v48, %v4394_v61 }
 0x29f   :  { %v980_v57 = vmul.f32 %v948_v48, %v4395_v12  ;;  %v981_v1 = vmul.f32 %v948_v48, %v4396_v52  ;;  %v982_v62 = vmul.f32 %v948_v48, %v4397_v2 }
 0x2a5   :  { %v938_v4 = vpop.permute.xlu1 %937 }
 0x2a6   :  { %v971_v43 = vmul.f32 %v938_v4, %v3103_v18  ;;  %v972_v36 = vmul.f32 %v938_v4, %v3105_v19  ;;  %v973_v21 = vmul.f32 %v938_v4, %v3085_v8  ;;  %v974_v53 = vmul.f32 %v938_v4, %v3088_v9 }
 0x2a7   :  { %v975_v18 = vmul.f32 %v943_v58, %v3115_v23  ;;  %v977_v19 = vmul.f32 %v943_v58, %v3097_v14  ;;  %v967_v9 = vmul.f32 %v933_v41, %v4390_v34 }
 0x2a9   :  { %v1010_v42 = vpop.permute.xlu0 %1009  ;;  %v3387_v22 = vpop.permute.xlu2 %1024 }
 0x2aa   :  { %v1043_v35 = vadd.f32 %v1010_v42, %v971_v43  ;;  %v1044_v31 = vadd.f32 %v1010_v42, %v972_v36  ;;  %v1045_v54 = vadd.f32 %v1010_v42, %v973_v21  ;;  %v1046_v8 = vadd.f32 %v1010_v42, %v974_v53 }
 0x2ac   :  { %vm1075_vm13 = vcmp.gt.f32.partialorder %v1043_v35, 0.0  ;;  %vm1076_vm14 = vcmp.gt.f32.partialorder %v1044_v31, 0.0  ;;  %v1107_v23 = vmul.f32 0.05, %v1043_v35  ;;  %v1108_v39 = vmul.f32 0.05, %v1044_v31 }
 0x2ad   :  { %v1109_v44 = vmul.f32 0.05, %v1045_v54  ;;  %v1110_v50 = vmul.f32 0.05, %v1046_v8  ;;  %vm1077_vm12 = vcmp.gt.f32.partialorder %v1045_v54, 0.0  ;;  %vm1078_vm1 = vcmp.gt.f32.partialorder %v1046_v8, 0.0 }
 0x2ae   :  { %v1139_v47 = vsel %vm1075_vm13, %v1043_v35, %v1107_v23  ;;  %v1140_v45 = vsel %vm1076_vm14, %v1044_v31, %v1108_v39 }
 0x2af   :  { %v1141_v27 = vsel %vm1077_vm12, %v1045_v54, %v1109_v44  ;;  %v1142_v29 = vsel %vm1078_vm1, %v1046_v8, %v1110_v50  ;;  %v4398_v8 = vld [vmem:[#allocation28_spill] sm:$0xff] }
 0x2b1   :  { %v1015_v24 = vpop.permute.xlu1 %1014  ;;  %v1005_v40 = vpop.permute.xlu2 %1004 }
 0x2b2   :  { %v1047_v25 = vadd.f32 %v1015_v24, %v975_v18  ;;  %v1048_v14 = vadd.f32 %v1015_v24, %v976_v6  ;;  %v1049_v26 = vadd.f32 %v1015_v24, %v977_v19  ;;  %v1050_v15 = vadd.f32 %v1015_v24, %v978_v7 }
 0x2b3   :  { %v3419_v16 = vadd.f32 %v1005_v40, %v967_v9  ;;  %v3424_v55 = vadd.f32 %v1005_v40, %v968_v51  ;;  %v3426_v38 = vadd.f32 %v1005_v40, %v969_v60  ;;  %v3428_v20 = vadd.f32 %v1005_v40, %v970_v0  ;;  %v4399_v9 = vld [vmem:[#allocation29_spill] sm:$0xff]  ;;  %v4400_v60 = vld [vmem:[#allocation24_spill] sm:$0xff] }
 0x2b4   :  { %vm1079_vm15 = vcmp.gt.f32.partialorder %v1047_v25, 0.0  ;;  %vm1080_vm9 = vcmp.gt.f32.partialorder %v1048_v14, 0.0  ;;  %vm1081_vm10 = vcmp.gt.f32.partialorder %v1049_v26, 0.0  ;;  %vm1082_vm11 = vcmp.gt.f32.partialorder %v1050_v15, 0.0  ;;  %v4401_v0 = vld [vmem:[#allocation25_spill] sm:$0xff] }
 0x2b5   :  { %v1111_v32 = vmul.f32 0.05, %v1047_v25  ;;  %v1112_v11 = vmul.f32 0.05, %v1048_v14  ;;  %v1113_v49 = vmul.f32 0.05, %v1049_v26 }
 0x2b6   :  { %v1114_v56 = vmul.f32 0.05, %v1050_v15  ;;  %v3439_v35 = vmul.f32 0.05, %v3419_v16  ;;  %v3442_v31 = vmul.f32 0.05, %v3424_v55 }
 0x2b7   :  { %v1143_v17 = vsel %vm1079_vm15, %v1047_v25, %v1111_v32  ;;  %v1144_v63 = vsel %vm1080_vm9, %v1048_v14, %v1112_v11  ;;  %v1145_v30 = vsel %vm1081_vm10, %v1049_v26, %v1113_v49  ;;  %vm1071_vm9 = vcmp.gt.f32.partialorder %v3419_v16, 0.0 }
 0x2b8   :  { %v1146_v59 = vsel %vm1082_vm11, %v1050_v15, %v1114_v56  ;;  %v3430_v41 = vpack.c.bf16 %v1143_v17, %v1139_v47  ;;  %v3432_v43 = vpack.c.bf16 %v1144_v63, %v1140_v45  ;;  %v3434_v36 = vpack.c.bf16 %v1145_v30, %v1141_v27 }
 0x2b9   :  { %v1020_v58 = vpop.permute.xlu1 %1019  ;;  %v3436_v21 = vpack.c.bf16 %v1146_v59, %v1142_v29  ;;  %vm1072_vm10 = vcmp.gt.f32.partialorder %v3424_v55, 0.0  ;;  %vm1073_vm11 = vcmp.gt.f32.partialorder %v3426_v38, 0.0  ;;  %v1105_v51 = vmul.f32 0.05, %v3426_v38  ;;  %v4402_v29 = vld [vmem:[#allocation14_spill] sm:$0xff] }
 0x2ba   :  { %v1051_v48 = vadd.f32 %v1020_v58, %v979_v46  ;;  %v1052_v4 = vadd.f32 %v1020_v58, %v980_v57  ;;  %v1053_v42 = vadd.f32 %v1020_v58, %v981_v1  ;;  %v1054_v53 = vadd.f32 %v1020_v58, %v982_v62  ;;  %v4403_v58 = vld [vmem:[#allocation15_spill] sm:$0xff] }
 0x2bb   :  { %v1106_v13 = vmul.f32 0.05, %v3428_v20  ;;  %vm1074_vm12 = vcmp.gt.f32.partialorder %v3428_v20, 0.0 }
 0x2bc   :  { %vm1083_vm1 = vcmp.gt.f32.partialorder %v1051_v48, 0.0  ;;  %vm1084_vm13 = vcmp.gt.f32.partialorder %v1052_v4, 0.0  ;;  %vm1085_vm14 = vcmp.gt.f32.partialorder %v1053_v42, 0.0  ;;  %vm1086_vm15 = vcmp.gt.f32.partialorder %v1054_v53, 0.0 }
 0x2bd   :  { %v1115_v18 = vmul.f32 0.05, %v1051_v48  ;;  %v1116_v6 = vmul.f32 0.05, %v1052_v4  ;;  %v953_v19 = vpop.permute.xlu0 %952  ;;  %v1117_v7 = vmul.f32 0.05, %v1053_v42 }
 0x2be   :  { %v1118_v54 = vmul.f32 0.05, %v1054_v53  ;;  %v983_v34 = vmul.f32 %v953_v19, %v4398_v8  ;;  %v984_v28 = vmul.f32 %v953_v19, %v4399_v9  ;;  %v985_v37 = vmul.f32 %v953_v19, %v4400_v60  ;;  %v4404_v8 = vld [vmem:[#allocation10_spill] sm:$0xff] }
 0x2bf   :  { %v986_v61 = vmul.f32 %v953_v19, %v4401_v0  ;;  %v1147_v46 = vsel %vm1083_vm1, %v1051_v48, %v1115_v18  ;;  %v1148_v23 = vsel %vm1084_vm13, %v1052_v4, %v1116_v6  ;;  %v1149_v14 = vsel %vm1085_vm14, %v1053_v42, %v1117_v7  ;;  %v990_v7 = vpop.permute.xlu2 %989  ;;  %v4407_v0 = vld [vmem:[#allocation17_spill] sm:$0xff] }
 0x2c0   :  { %v1055_v24 = vadd.f32 %v3387_v22, %v983_v34  ;;  %v1056_v25 = vadd.f32 %v3387_v22, %v984_v28  ;;  %v1150_v26 = vsel %vm1086_vm15, %v1054_v53, %v1118_v54  ;;  %v1057_v15 = vadd.f32 %v3387_v22, %v985_v37 }
 0x2c1   :  { %v1058_v12 = vadd.f32 %v3387_v22, %v986_v61  ;;  %v1000_v57 = vpop.permute.xlu1 %999  ;;  %v1135_v4 = vsel %vm1071_vm9, %v3419_v16, %v3439_v35  ;;  %v1136_v42 = vsel %vm1072_vm10, %v3424_v55, %v3442_v31  ;;  %v1137_v53 = vsel %vm1073_vm11, %v3426_v38, %v1105_v51  ;;  %v4405_v35 = vld [vmem:[#allocation11_spill] sm:$0xff] }
 0x2c2   :  { %vm1087_vm0 = vcmp.gt.f32.partialorder %v1055_v24, 0.0  ;;  %vm1088_vm3 = vcmp.gt.f32.partialorder %v1056_v25, 0.0  ;;  %v1119_v39 = vmul.f32 0.05, %v1055_v24  ;;  %v1120_v44 = vmul.f32 0.05, %v1056_v25 }
 0x2c3   :  { %vm1089_vm1 = vcmp.gt.f32.partialorder %v1057_v15, 0.0  ;;  %vm1090_vm2 = vcmp.gt.f32.partialorder %v1058_v12, 0.0  ;;  %v1121_v50 = vmul.f32 0.05, %v1057_v15  ;;  %v1122_v40 = vmul.f32 0.05, %v1058_v12 }
 0x2c4   :  { %v1151_v52 = vsel %vm1087_vm0, %v1055_v24, %v1119_v39  ;;  %v1152_v1 = vsel %vm1088_vm3, %v1056_v25, %v1120_v44  ;;  %v1035_v32 = vadd.f32 %v1000_v57, %v3392_v5  ;;  %v1036_v11 = vadd.f32 %v1000_v57, %v3395_v10  ;;  %v4409_v24 = vld [vmem:[#allocation13_spill] sm:$0xff] }
 0x2c5   :  { %v1153_v49 = vsel %vm1089_vm1, %v1057_v15, %v1121_v50  ;;  %v1154_v2 = vsel %vm1090_vm2, %v1058_v12, %v1122_v40  ;;  %v3464_v62 = vpack.c.bf16 %v1151_v52, %v1147_v46  ;;  %v3466_v22 = vpack.c.bf16 %v1152_v1, %v1148_v23  ;;  %v918_v56 = vpop.permute.xlu0 %917  ;;  %v4408_v46 = vld [vmem:[#allocation12_spill] sm:$0xff] }
 0x2c6   :  { %v3468_v47 = vpack.c.bf16 %v1153_v49, %v1149_v14  ;;  %v3470_v45 = vpack.c.bf16 %v1154_v2, %v1150_v26  ;;  %v1037_v17 = vadd.f32 %v1000_v57, %v3400_v3  ;;  %v1038_v63 = vadd.f32 %v1000_v57, %v3403_v33 }
 0x2c7   :  { %vm1067_vm0 = vcmp.gt.f32.partialorder %v1035_v32, 0.0  ;;  %vm1068_vm3 = vcmp.gt.f32.partialorder %v1036_v11, 0.0  ;;  %v1099_v5 = vmul.f32 0.05, %v1035_v32  ;;  %v1100_v30 = vmul.f32 0.05, %v1036_v11  ;;  %1182 = vmatpush.bf16.msrb.mxu0 %v3464_v62  ;;  %1195 = vmatpush.bf16.msrb.mxu1 %v3466_v22 }
 0x2c8   :  { %vm1069_vm2 = vcmp.gt.f32.partialorder %v1037_v17, 0.0  ;;  %vm1070_vm13 = vcmp.gt.f32.partialorder %v1038_v63, 0.0  ;;  %v1101_v10 = vmul.f32 0.05, %v1037_v17  ;;  %v1102_v59 = vmul.f32 0.05, %v1038_v63  ;;  %1208 = vmatpush.bf16.msrb.mxu2 %v3468_v47  ;;  %1221 = vmatpush.bf16.msrb.mxu3 %v3470_v45 }
 0x2c9   :  { %v1131_v27 = vsel %vm1067_vm0, %v1035_v32, %v1099_v5  ;;  %v1132_v3 = vsel %vm1068_vm3, %v1036_v11, %v1100_v30  ;;  %v955_v33 = vmul.f32 %v918_v56, %v4402_v29  ;;  %v956_v48 = vmul.f32 %v918_v56, %v4403_v58  ;;  %v923_v6 = vpop.permute.xlu1 %922  ;;  %v1171_v58 = vld [vmem:[%s4327_s2] sm:$0x3] }
 0x2ca   :  { %v1133_v18 = vsel %vm1069_vm2, %v1037_v17, %v1101_v10  ;;  %v1138_v19 = vsel %vm1074_vm12, %v3428_v20, %v1106_v13  ;;  %v1134_v54 = vsel %vm1070_vm13, %v1038_v63, %v1102_v59  ;;  %v957_v16 = vmul.f32 %v918_v56, %v4404_v8  ;;  %v4406_v13 = vld [vmem:[#allocation16_spill] sm:$0xff] }
 0x2cb   :  { %v958_v34 = vmul.f32 %v918_v56, %v4405_v35  ;;  %1183 = vmatpush.bf16.msrb.mxu0 %v3430_v41  ;;  %v3498_v55 = vpack.c.bf16 %v1135_v4, %v1131_v27  ;;  %v3500_v31 = vpack.c.bf16 %v1136_v42, %v1132_v3  ;;  %v1027_v38 = vadd.f32 %v990_v7, %v955_v33  ;;  %v2097_v33 = vld [vmem:[%s4327_s2 + $0x2] sm:$0x3]  ;;  %v2111_v4 = vld [vmem:[%s4327_s2 + $0x6] sm:$0x3]  ;;  %v2116_v42 = vld [vmem:[%s4327_s2 + $0x8] sm:$0x3] }
 0x2cc   :  { %v1028_v9 = vadd.f32 %v990_v7, %v956_v48  ;;  %1196 = vmatpush.bf16.msrb.mxu1 %v3432_v43  ;;  %v3503_v28 = vpack.c.bf16 %v1137_v53, %v1133_v18  ;;  %v1029_v20 = vadd.f32 %v990_v7, %v957_v16  ;;  %v959_v60 = vmul.f32 %v923_v6, %v4406_v13  ;;  %v2106_v48 = vld [vmem:[%s4327_s2 + $0x4] sm:$0x3]  ;;  %v2121_v53 = vld [vmem:[%s4327_s2 + $0xa] sm:$0x3]  ;;  %v2126_v18 = vld [vmem:[%s4327_s2 + $0xc] sm:$0x3] }
 0x2cd   :  { %v1030_v51 = vadd.f32 %v990_v7, %v958_v34  ;;  %1209 = vmatpush.bf16.msrb.mxu2 %v3434_v36  ;;  %v995_v37 = vpop.permute.xlu0 %994  ;;  %vm1059_vm14 = vcmp.gt.f32.partialorder %v1027_v38, 0.0  ;;  %v960_v61 = vmul.f32 %v923_v6, %v4407_v0  ;;  %v961_v23 = vmul.f32 %v923_v6, %v4408_v46  ;;  %1222 = vmatpush.bf16.msrb.mxu3 %v3436_v21  ;;  %v3771_v7 = vld [vmem:[%s4332_s7 + $0x168] sm:$0xff]  ;;  %v3790_v34 = vld [vmem:[%s4332_s7 + $0xe0] sm:$0xff]  ;;  %v3838_v13 = vld [vmem:[%s4332_s7 + $0x1d8] sm:$0xff] }
 0x2ce   :  { %v962_v25 = vmul.f32 %v923_v6, %v4409_v24  ;;  %v3511_v14 = vpack.c.bf16 %v1138_v19, %v1134_v54  ;;  %v1091_v26 = vmul.f32 0.05, %v1027_v38  ;;  %v1092_v15 = vmul.f32 0.05, %v1028_v9  ;;  %v3759_v6 = vld [vmem:[%s4332_s7 + $0x1f0] sm:$0xff]  ;;  %v3765_v19 = vld [vmem:[%s4332_s7 + $0xe8] sm:$0xff] }
 0x2cf   :  { %v1093_v12 = vmul.f32 0.05, %v1029_v20  ;;  %1184 = vmatpush.bf16.msrb.mxu0 %v3498_v55  ;;  %v1031_v57 = vadd.f32 %v995_v37, %v959_v60  ;;  %v1032_v39 = vadd.f32 %v995_v37, %v960_v61  ;;  %v1033_v44 = vadd.f32 %v995_v37, %v961_v23  ;;  %v3777_v16 = vld [vmem:[%s4332_s7 + $0x68] sm:$0xff]  ;;  %v3844_v60 = vld [vmem:[%s4332_s7 + $0x150] sm:$0xff] }
 0x2d0   :  { %v1034_v50 = vadd.f32 %v995_v37, %v962_v25  ;;  %1197 = vmatpush.bf16.msrb.mxu1 %v3500_v31  ;;  %vm1060_vm15 = vcmp.gt.f32.partialorder %v1028_v9, 0.0  ;;  %vm1061_vm9 = vcmp.gt.f32.partialorder %v1029_v20, 0.0  ;;  %vm1062_vm10 = vcmp.gt.f32.partialorder %v1030_v51, 0.0  ;;  %v3783_v35 = vld [vmem:[%s4332_s7 + $0x1e8] sm:$0xff]  ;;  %v3850_v37 = vld [vmem:[%s4332_s7 + $0x50] sm:$0xff] }
 0x2d1   :  { %v1094_v40 = vmul.f32 0.05, %v1030_v51  ;;  %1210 = vmatpush.bf16.msrb.mxu2 %v3503_v28  ;;  %vm1063_vm11 = vcmp.gt.f32.partialorder %v1031_v57, 0.0  ;;  %vm1064_vm12 = vcmp.gt.f32.partialorder %v1032_v39, 0.0  ;;  %vm1065_vm1 = vcmp.gt.f32.partialorder %v1033_v44, 0.0  ;;  %1223 = vmatpush.bf16.msrb.mxu3 %v3511_v14  ;;  %v3859_v23 = vld [vmem:[%s4332_s7 + $0xc8] sm:$0xff] }
 0x2d2   :  { %vm1066_vm0 = vcmp.gt.f32.partialorder %v1034_v50, 0.0  ;;  %v1095_v52 = vmul.f32 0.05, %v1031_v57  ;;  %v1096_v1 = vmul.f32 0.05, %v1032_v39  ;;  %v1123_v49 = vsel %vm1059_vm14, %v1027_v38, %v1091_v26  ;;  %v3808_v38 = vld [vmem:[%s4332_s7 + $0xd8] sm:$0xff] }
 0x2d3   :  { %v1097_v32 = vmul.f32 0.05, %v1033_v44  ;;  %v1098_v11 = vmul.f32 0.05, %v1034_v50  ;;  %v1124_v2 = vsel %vm1060_vm15, %v1028_v9, %v1092_v15  ;;  %v1125_v56 = vsel %vm1061_vm9, %v1029_v20, %v1093_v12  ;;  %v3814_v9 = vld [vmem:[%s4332_s7 + $0x1e0] sm:$0xff]  ;;  %v3826_v20 = vld [vmem:[%s4332_s7 + $0x58] sm:$0xff] }
 0x2d4   :  { %v1126_v17 = vsel %vm1062_vm10, %v1030_v51, %v1094_v40  ;;  %v1127_v63 = vsel %vm1063_vm11, %v1031_v57, %v1095_v52  ;;  %v1128_v5 = vsel %vm1064_vm12, %v1032_v39, %v1096_v1  ;;  %vm1174_vm3 = vcmask 523264   ;;  %v3832_v51 = vld [vmem:[%s4332_s7 + $0xd0] sm:$0xff]  ;;  %v3878_v26 = vld [vmem:[%s4332_s7 + $0x148] sm:$0xff]  ;;  %v3884_v15 = vld [vmem:[%s4332_s7 + $0xc0] sm:$0xff] }
 0x2d5   :  { %v1129_v30 = vsel %vm1065_vm1, %v1033_v44, %v1097_v32  ;;  %v1130_v10 = vsel %vm1066_vm0, %v1034_v50, %v1098_v11  ;;  %v3518_v59 = vpack.c.bf16 %v1127_v63, %v1123_v49  ;;  %v3520_v27 = vpack.c.bf16 %v1128_v5, %v1124_v2  ;;  %v2136_v0 = vld [vmem:[%s4327_s2 + $0x10] sm:$0x3]  ;;  %v3890_v12 = vld [vmem:[%s4332_s7 + $0x48] sm:$0xff]  ;;  %v3896_v57 = vld [vmem:[%s4332_s7 + $0x140] sm:$0xff] }
 0x2d6   :  { %v3522_v3 = vpack.c.bf16 %v1129_v30, %v1125_v56  ;;  %v3524_v29 = vpack.c.bf16 %v1130_v10, %v1126_v17  ;;  %v3865_v24 = vld [vmem:[%s4332_s7 + $0x1d0] sm:$0xff]  ;;  %v3902_v39 = vld [vmem:[%s4332_s7 + $0x1c8] sm:$0xff]  ;;  %v3908_v44 = vld [vmem:[%s4332_s7 + $0xb8] sm:$0xff] }
 0x2d7   :  { %1185 = vmatpush.bf16.msrb.mxu0 %v3518_v59  ;;  %1198 = vmatpush.bf16.msrb.mxu1 %v3520_v27  ;;  %v3914_v50 = vld [vmem:[%s4332_s7 + $0x40] sm:$0xff]  ;;  %v3920_v1 = vld [vmem:[%s4332_s7 + $0x138] sm:$0xff]  ;;  %v3932_v11 = vld [vmem:[%s4332_s7 + $0xb0] sm:$0xff] }
 0x2d8   :  { %1211 = vmatpush.bf16.msrb.mxu2 %v3522_v3  ;;  %1224 = vmatpush.bf16.msrb.mxu3 %v3524_v29  ;;  %v3926_v32 = vld [vmem:[%s4332_s7 + $0x1c0] sm:$0xff]  ;;  %v3938_v49 = vld [vmem:[%s4332_s7 + $0x38] sm:$0xff]  ;;  %v3944_v2 = vld [vmem:[%s4332_s7 + $0x130] sm:$0xff] }
 0x2d9   :  { %v3950_v56 = vld [vmem:[%s4332_s7 + $0x1b8] sm:$0xff]  ;;  %v3960_v5 = vld [vmem:[%s4332_s7 + $0xa8] sm:$0xff]  ;;  %v3966_v30 = vld [vmem:[%s4332_s7 + $0x30] sm:$0xff] }
 0x2da   :  { %2098 = vmatmul.msk.bf16.vlgmr.msrb.gmra.mxu0 %vm1174_vm3, %v2097_v33  ;;  %2099 = vmatmul.msk.bf16.vlgmr.msrb.gmra.mxu1 %vm1174_vm3, %v2097_v33  ;;  %v3972_v10 = vld [vmem:[%s4332_s7 + $0x128] sm:$0xff] }
 0x2db   :  { %1249 = vmatpush.bf16.msra.mxu0 %v3464_v62  ;;  %1262 = vmatpush.bf16.msra.mxu1 %v3466_v22 }
 0x2dc   :  { %1275 = vmatpush.bf16.msra.mxu2 %v3468_v47  ;;  %1288 = vmatpush.bf16.msra.mxu3 %v3470_v45 }
 0x2dd   :  { %2100 = vmatmul.msk.bf16.vlgmr.msrb.gmra.mxu2 %vm1174_vm3, %v2097_v33  ;;  %2101 = vmatmul.msk.bf16.vlgmr.msrb.gmra.mxu3 %vm1174_vm3, %v2097_v33  ;;  %v4002_v33 = vld [vmem:[%s4332_s7 + $0x1a8] sm:$0xff] }
 0x2df   :  { %1250 = vmatpush.bf16.msra.mxu0 %v3430_v41  ;;  %1263 = vmatpush.bf16.msra.mxu1 %v3432_v43 }
 0x2e0   :  { %1276 = vmatpush.bf16.msra.mxu2 %v3434_v36  ;;  %1289 = vmatpush.bf16.msra.mxu3 %v3436_v21 }
 0x2e3   :  { %1251 = vmatpush.bf16.msra.mxu0 %v3498_v55  ;;  %1264 = vmatpush.bf16.msra.mxu1 %v3500_v31 }
 0x2e4   :  { %1277 = vmatpush.bf16.msra.mxu2 %v3503_v28  ;;  %1290 = vmatpush.bf16.msra.mxu3 %v3511_v14 }
 0x2e7   :  { %1252 = vmatpush.bf16.msra.mxu0 %v3518_v59  ;;  %1265 = vmatpush.bf16.msra.mxu1 %v3520_v27 }
 0x2e8   :  { %1278 = vmatpush.bf16.msra.mxu2 %v3522_v3  ;;  %1291 = vmatpush.bf16.msra.mxu3 %v3524_v29 }
 0x2ea   :  { %2102 = vmatmul.msk.bf16.vlgmr.msra.gmra.mxu0 %vm1174_vm3, %v1171_v58  ;;  %2103 = vmatmul.msk.bf16.vlgmr.msra.gmra.mxu1 %vm1174_vm3, %v1171_v58 }
 0x2eb   :  { %1306 = vmatpush.bf16.msrb.mxu0 %v3464_v62  ;;  %1319 = vmatpush.bf16.msrb.mxu1 %v3466_v22 }
 0x2ec   :  { %1332 = vmatpush.bf16.msrb.mxu2 %v3468_v47  ;;  %1345 = vmatpush.bf16.msrb.mxu3 %v3470_v45 }
 0x2ed   :  { %2104 = vmatmul.msk.bf16.vlgmr.msra.gmra.mxu2 %vm1174_vm3, %v1171_v58  ;;  %2105 = vmatmul.msk.bf16.vlgmr.msra.gmra.mxu3 %vm1174_vm3, %v1171_v58  ;;  %v4008_v58 = vld [vmem:[%s4332_s7 + $0x98] sm:$0xff] }
 0x2ef   :  { %1307 = vmatpush.bf16.msrb.mxu0 %v3430_v41  ;;  %1320 = vmatpush.bf16.msrb.mxu1 %v3432_v43 }
 0x2f0   :  { %1333 = vmatpush.bf16.msrb.mxu2 %v3434_v36  ;;  %1346 = vmatpush.bf16.msrb.mxu3 %v3436_v21 }
 0x2f3   :  { %1308 = vmatpush.bf16.msrb.mxu0 %v3498_v55  ;;  %1321 = vmatpush.bf16.msrb.mxu1 %v3500_v31 }
 0x2f4   :  { %1334 = vmatpush.bf16.msrb.mxu2 %v3503_v28  ;;  %1347 = vmatpush.bf16.msrb.mxu3 %v3511_v14 }
 0x2f7   :  { %1309 = vmatpush.bf16.msrb.mxu0 %v3518_v59  ;;  %1322 = vmatpush.bf16.msrb.mxu1 %v3520_v27 }
 0x2f8   :  { %1335 = vmatpush.bf16.msrb.mxu2 %v3522_v3  ;;  %1348 = vmatpush.bf16.msrb.mxu3 %v3524_v29 }
 0x2fa   :  { %2107 = vmatmul.msk.bf16.vlgmr.msrb.gmra.mxu0 %vm1174_vm3, %v2106_v48  ;;  %2108 = vmatmul.msk.bf16.vlgmr.msrb.gmra.mxu1 %vm1174_vm3, %v2106_v48 }
 0x2fb   :  { %1379 = vmatpush.bf16.msra.mxu0 %v3464_v62  ;;  %1392 = vmatpush.bf16.msra.mxu1 %v3466_v22 }
 0x2fc   :  { %1405 = vmatpush.bf16.msra.mxu2 %v3468_v47  ;;  %1418 = vmatpush.bf16.msra.mxu3 %v3470_v45 }
 0x2fd   :  { %2109 = vmatmul.msk.bf16.vlgmr.msrb.gmra.mxu2 %vm1174_vm3, %v2106_v48  ;;  %2110 = vmatmul.msk.bf16.vlgmr.msrb.gmra.mxu3 %vm1174_vm3, %v2106_v48  ;;  %v4014_v48 = vld [vmem:[%s4332_s7 + $0x20] sm:$0xff] }
 0x2ff   :  { %1380 = vmatpush.bf16.msra.mxu0 %v3430_v41  ;;  %1393 = vmatpush.bf16.msra.mxu1 %v3432_v43 }
 0x300   :  { %1406 = vmatpush.bf16.msra.mxu2 %v3434_v36  ;;  %1419 = vmatpush.bf16.msra.mxu3 %v3436_v21 }
 0x303   :  { %1381 = vmatpush.bf16.msra.mxu0 %v3498_v55  ;;  %1394 = vmatpush.bf16.msra.mxu1 %v3500_v31 }
 0x304   :  { %1407 = vmatpush.bf16.msra.mxu2 %v3503_v28  ;;  %1420 = vmatpush.bf16.msra.mxu3 %v3511_v14 }
 0x307   :  { %1382 = vmatpush.bf16.msra.mxu0 %v3518_v59  ;;  %1395 = vmatpush.bf16.msra.mxu1 %v3520_v27 }
 0x308   :  { %1408 = vmatpush.bf16.msra.mxu2 %v3522_v3  ;;  %1421 = vmatpush.bf16.msra.mxu3 %v3524_v29 }
 0x30a   :  { %2112 = vmatmul.msk.bf16.vlgmr.msra.gmra.mxu0 %vm1174_vm3, %v2111_v4  ;;  %2113 = vmatmul.msk.bf16.vlgmr.msra.gmra.mxu1 %vm1174_vm3, %v2111_v4 }
 0x30b   :  { %1452 = vmatpush.bf16.msrb.mxu0 %v3464_v62  ;;  %1465 = vmatpush.bf16.msrb.mxu1 %v3466_v22 }
 0x30c   :  { %1478 = vmatpush.bf16.msrb.mxu2 %v3468_v47  ;;  %1491 = vmatpush.bf16.msrb.mxu3 %v3470_v45 }
 0x30d   :  { %2114 = vmatmul.msk.bf16.vlgmr.msra.gmra.mxu2 %vm1174_vm3, %v2111_v4  ;;  %2115 = vmatmul.msk.bf16.vlgmr.msra.gmra.mxu3 %vm1174_vm3, %v2111_v4  ;;  %v4020_v4 = vld [vmem:[%s4332_s7 + $0x118] sm:$0xff] }
 0x30f   :  { %1453 = vmatpush.bf16.msrb.mxu0 %v3430_v41  ;;  %1466 = vmatpush.bf16.msrb.mxu1 %v3432_v43 }
 0x310   :  { %1479 = vmatpush.bf16.msrb.mxu2 %v3434_v36  ;;  %1492 = vmatpush.bf16.msrb.mxu3 %v3436_v21 }
 0x313   :  { %1454 = vmatpush.bf16.msrb.mxu0 %v3498_v55  ;;  %1467 = vmatpush.bf16.msrb.mxu1 %v3500_v31 }
 0x314   :  { %1480 = vmatpush.bf16.msrb.mxu2 %v3503_v28  ;;  %1493 = vmatpush.bf16.msrb.mxu3 %v3511_v14 }
 0x317   :  { %1455 = vmatpush.bf16.msrb.mxu0 %v3518_v59  ;;  %1468 = vmatpush.bf16.msrb.mxu1 %v3520_v27 }
 0x318   :  { %1481 = vmatpush.bf16.msrb.mxu2 %v3522_v3  ;;  %1494 = vmatpush.bf16.msrb.mxu3 %v3524_v29 }
 0x31a   :  { %2117 = vmatmul.msk.bf16.vlgmr.msrb.gmra.mxu0 %vm1174_vm3, %v2116_v42  ;;  %2118 = vmatmul.msk.bf16.vlgmr.msrb.gmra.mxu1 %vm1174_vm3, %v2116_v42 }
 0x31b   :  { %1525 = vmatpush.bf16.msra.mxu0 %v3464_v62  ;;  %1538 = vmatpush.bf16.msra.mxu1 %v3466_v22 }
 0x31c   :  { %1551 = vmatpush.bf16.msra.mxu2 %v3468_v47  ;;  %1564 = vmatpush.bf16.msra.mxu3 %v3470_v45 }
 0x31d   :  { %2119 = vmatmul.msk.bf16.vlgmr.msrb.gmra.mxu2 %vm1174_vm3, %v2116_v42  ;;  %2120 = vmatmul.msk.bf16.vlgmr.msrb.gmra.mxu3 %vm1174_vm3, %v2116_v42  ;;  %v4026_v42 = vld [vmem:[%s4332_s7 + $0x1a0] sm:$0xff] }
 0x31f   :  { %1526 = vmatpush.bf16.msra.mxu0 %v3430_v41  ;;  %1539 = vmatpush.bf16.msra.mxu1 %v3432_v43 }
 0x320   :  { %1552 = vmatpush.bf16.msra.mxu2 %v3434_v36  ;;  %1565 = vmatpush.bf16.msra.mxu3 %v3436_v21 }
 0x323   :  { %1527 = vmatpush.bf16.msra.mxu0 %v3498_v55  ;;  %1540 = vmatpush.bf16.msra.mxu1 %v3500_v31 }
 0x324   :  { %1553 = vmatpush.bf16.msra.mxu2 %v3503_v28  ;;  %1566 = vmatpush.bf16.msra.mxu3 %v3511_v14 }
 0x327   :  { %1528 = vmatpush.bf16.msra.mxu0 %v3518_v59  ;;  %1541 = vmatpush.bf16.msra.mxu1 %v3520_v27 }
 0x328   :  { %1554 = vmatpush.bf16.msra.mxu2 %v3522_v3  ;;  %1567 = vmatpush.bf16.msra.mxu3 %v3524_v29 }
 0x32a   :  { %2122 = vmatmul.msk.bf16.vlgmr.msra.gmra.mxu0 %vm1174_vm3, %v2121_v53  ;;  %2123 = vmatmul.msk.bf16.vlgmr.msra.gmra.mxu1 %vm1174_vm3, %v2121_v53 }
 0x32b   :  { %1598 = vmatpush.bf16.msrb.mxu0 %v3464_v62  ;;  %1611 = vmatpush.bf16.msrb.mxu1 %v3466_v22 }
 0x32c   :  { %1624 = vmatpush.bf16.msrb.mxu2 %v3468_v47  ;;  %1637 = vmatpush.bf16.msrb.mxu3 %v3470_v45 }
 0x32d   :  { %2124 = vmatmul.msk.bf16.vlgmr.msra.gmra.mxu2 %vm1174_vm3, %v2121_v53  ;;  %2125 = vmatmul.msk.bf16.vlgmr.msra.gmra.mxu3 %vm1174_vm3, %v2121_v53  ;;  %v4032_v53 = vld [vmem:[%s4332_s7 + $0x90] sm:$0xff] }
 0x32f   :  { %1599 = vmatpush.bf16.msrb.mxu0 %v3430_v41  ;;  %1612 = vmatpush.bf16.msrb.mxu1 %v3432_v43 }
 0x330   :  { %1625 = vmatpush.bf16.msrb.mxu2 %v3434_v36  ;;  %1638 = vmatpush.bf16.msrb.mxu3 %v3436_v21 }
 0x333   :  { %1600 = vmatpush.bf16.msrb.mxu0 %v3498_v55  ;;  %1613 = vmatpush.bf16.msrb.mxu1 %v3500_v31 }
 0x334   :  { %1626 = vmatpush.bf16.msrb.mxu2 %v3503_v28  ;;  %1639 = vmatpush.bf16.msrb.mxu3 %v3511_v14 }
 0x337   :  { %1601 = vmatpush.bf16.msrb.mxu0 %v3518_v59  ;;  %1614 = vmatpush.bf16.msrb.mxu1 %v3520_v27 }
 0x338   :  { %1627 = vmatpush.bf16.msrb.mxu2 %v3522_v3  ;;  %1640 = vmatpush.bf16.msrb.mxu3 %v3524_v29 }
 0x33a   :  { %2127 = vmatmul.msk.bf16.vlgmr.msrb.gmra.mxu0 %vm1174_vm3, %v2126_v18  ;;  %2128 = vmatmul.msk.bf16.vlgmr.msrb.gmra.mxu1 %vm1174_vm3, %v2126_v18 }
 0x33b   :  { %1671 = vmatpush.bf16.msra.mxu0 %v3464_v62  ;;  %1684 = vmatpush.bf16.msra.mxu1 %v3466_v22 }
 0x33c   :  { %1697 = vmatpush.bf16.msra.mxu2 %v3468_v47  ;;  %1710 = vmatpush.bf16.msra.mxu3 %v3470_v45 }
 0x33d   :  { %2129 = vmatmul.msk.bf16.vlgmr.msrb.gmra.mxu2 %vm1174_vm3, %v2126_v18  ;;  %2130 = vmatmul.msk.bf16.vlgmr.msrb.gmra.mxu3 %vm1174_vm3, %v2126_v18  ;;  %v4038_v18 = vld [vmem:[%s4332_s7 + $0x18] sm:$0xff] }
 0x33f   :  { %1672 = vmatpush.bf16.msra.mxu0 %v3430_v41  ;;  %1685 = vmatpush.bf16.msra.mxu1 %v3432_v43 }
 0x340   :  { %1698 = vmatpush.bf16.msra.mxu2 %v3434_v36  ;;  %1711 = vmatpush.bf16.msra.mxu3 %v3436_v21 }
 0x343   :  { %1673 = vmatpush.bf16.msra.mxu0 %v3498_v55  ;;  %1686 = vmatpush.bf16.msra.mxu1 %v3500_v31 }
 0x344   :  { %1699 = vmatpush.bf16.msra.mxu2 %v3503_v28  ;;  %1712 = vmatpush.bf16.msra.mxu3 %v3511_v14 }
 0x347   :  { %1674 = vmatpush.bf16.msra.mxu0 %v3518_v59  ;;  %1687 = vmatpush.bf16.msra.mxu1 %v3520_v27 }
 0x348   :  { %1700 = vmatpush.bf16.msra.mxu2 %v3522_v3  ;;  %1713 = vmatpush.bf16.msra.mxu3 %v3524_v29 }
 0x34b   :  { %1744 = vmatpush.bf16.msrb.mxu0 %v3464_v62  ;;  %1757 = vmatpush.bf16.msrb.mxu1 %v3466_v22  ;;  %v2131_v62 = vld [vmem:[%s4327_s2 + $0xe] sm:$0x3]  ;;  %v3741_v22 = vld [vmem:[%s4332_s7 + $0xf0] sm:$0xff] }
 0x34c   :  { %1770 = vmatpush.bf16.msrb.mxu2 %v3468_v47  ;;  %1783 = vmatpush.bf16.msrb.mxu3 %v3470_v45  ;;  %v3747_v47 = vld [vmem:[%s4332_s7 + $0x170] sm:$0xff] }
 0x34d   :  { %2132 = vmatmul.msk.bf16.vlgmr.msra.gmra.mxu0 %vm1174_vm3, %v2131_v62  ;;  %2133 = vmatmul.msk.bf16.vlgmr.msra.gmra.mxu1 %vm1174_vm3, %v2131_v62  ;;  %v3753_v45 = vld [vmem:[%s4332_s7 + $0x70] sm:$0xff] }
 0x34e   :  { %2134 = vmatmul.msk.bf16.vlgmr.msra.gmra.mxu2 %vm1174_vm3, %v2131_v62  ;;  %2135 = vmatmul.msk.bf16.vlgmr.msra.gmra.mxu3 %vm1174_vm3, %v2131_v62 }
 0x34f   :  { %1745 = vmatpush.bf16.msrb.mxu0 %v3430_v41  ;;  %1758 = vmatpush.bf16.msrb.mxu1 %v3432_v43  ;;  %v3717_v41 = vld [vmem:[%s4332_s7 + $0xf8] sm:$0xff] }
 0x350   :  { %1771 = vmatpush.bf16.msrb.mxu2 %v3434_v36  ;;  %1784 = vmatpush.bf16.msrb.mxu3 %v3436_v21  ;;  %v3723_v43 = vld [vmem:[%s4332_s7 + $0x178] sm:$0xff] }
 0x351   :  { %v3729_v36 = vld [vmem:[%s4332_s7 + $0x78] sm:$0xff] }
 0x352   :  { %v3735_v21 = vld [vmem:[%s4332_s7 + $0x1f8] sm:$0xff] }
 0x353   :  { %1746 = vmatpush.bf16.msrb.mxu0 %v3498_v55  ;;  %1759 = vmatpush.bf16.msrb.mxu1 %v3500_v31  ;;  %v3796_v55 = vld [vmem:[%s4332_s7 + $0x160] sm:$0xff] }
 0x354   :  { %1772 = vmatpush.bf16.msrb.mxu2 %v3503_v28  ;;  %1785 = vmatpush.bf16.msrb.mxu3 %v3511_v14  ;;  %v3802_v31 = vld [vmem:[%s4332_s7 + $0x60] sm:$0xff]  ;;  %v3820_v28 = vld [vmem:[%s4332_s7 + $0x158] sm:$0xff] }
 0x357   :  { %1747 = vmatpush.bf16.msrb.mxu0 %v3518_v59  ;;  %1760 = vmatpush.bf16.msrb.mxu1 %v3520_v27  ;;  %v1187_v54 = vpop.f32.mrf.mxu0  ;;  %v1200_v8 = vpop.f32.mrf.mxu1  ;;  %v3978_v59 = vld [vmem:[%s4332_s7 + $0x1b0] sm:$0xff]  ;;  %v3984_v27 = vld [vmem:[%s4332_s7 + $0xa0] sm:$0xff] }
 0x358   :  { %1773 = vmatpush.bf16.msrb.mxu2 %v3522_v3  ;;  %1786 = vmatpush.bf16.msrb.mxu3 %v3524_v29  ;;  %v3990_v3 = vld [vmem:[%s4332_s7 + $0x28] sm:$0xff]  ;;  %v3996_v29 = vld [vmem:[%s4332_s7 + $0x120] sm:$0xff] }
 0x359   :  { %1230 = vrot.lane.b32.xlu0 %v1187_v54, %s2319_s19 }
 0x35b   :  { %1828 = vmatpush.msra.mxu1 %v3717_v41  ;;  %1808 = vmatpush.msra.mxu0 %v3729_v36 }
 0x35c   :  { %1848 = vmatpush.msra.mxu2 %v3723_v43  ;;  %1868 = vmatpush.msra.mxu3 %v3735_v21 }
 0x35d   :  { %1829 = vmatpush.msra.mxu1 %v3741_v22  ;;  %1809 = vmatpush.msra.mxu0 %v3753_v45 }
 0x35e   :  { %1849 = vmatpush.msra.mxu2 %v3747_v47  ;;  %1869 = vmatpush.msra.mxu3 %v3759_v6 }
 0x35f   :  { %1830 = vmatpush.msra.mxu1 %v3765_v19  ;;  %1810 = vmatpush.msra.mxu0 %v3777_v16  ;;  %v1189_v25 = vpop.f32.mrf.mxu0  ;;  %v1202_v14 = vpop.f32.mrf.mxu1 }
 0x360   :  { %1850 = vmatpush.msra.mxu2 %v3771_v7  ;;  %1870 = vmatpush.msra.mxu3 %v3783_v35  ;;  %v1213_v61 = vpop.f32.mrf.mxu2  ;;  %v1226_v46 = vpop.f32.mrf.mxu3  ;;  %v4060_v25 = vld [vmem:[%s4332_s7 + $0x88] sm:$0xff]  ;;  %v4066_v14 = vld [vmem:[%s4332_s7 + $0x10] sm:$0xff] }
 0x361   :  { %1831 = vmatpush.msra.mxu1 %v3790_v34  ;;  %1811 = vmatpush.msra.mxu0 %v3802_v31 }
 0x362   :  { %1851 = vmatpush.msra.mxu2 %v3796_v55  ;;  %1871 = vmatpush.msra.mxu3 %v3814_v9 }
 0x363   :  { %1832 = vmatpush.msra.mxu1 %v3808_v38  ;;  %1812 = vmatpush.msra.mxu0 %v3826_v20 }
 0x364   :  { %1852 = vmatpush.msra.mxu2 %v3820_v28  ;;  %1872 = vmatpush.msra.mxu3 %v3838_v13 }
 0x365   :  { %1833 = vmatpush.msra.mxu1 %v3832_v51  ;;  %1813 = vmatpush.msra.mxu0 %v3850_v37 }
 0x366   :  { %1853 = vmatpush.msra.mxu2 %v3844_v60  ;;  %1873 = vmatpush.msra.mxu3 %v3865_v24 }
 0x367   :  { %1834 = vmatpush.msra.mxu1 %v3859_v23  ;;  %1234 = vrot.lane.b32.xlu1 %v1213_v61, %s2319_s19  ;;  %v3953_v17 = vpop.f32.mrf.mxu0  ;;  %v3955_v63 = vpop.f32.mrf.mxu1 }
 0x368   :  { %1236 = vrot.lane.b32.xlu2 %v1226_v46, %s2319_s19  ;;  %1232 = vrot.lane.b32.xlu0 %v1200_v8, %s2319_s19  ;;  %v1215_v40 = vpop.f32.mrf.mxu2  ;;  %v1228_v52 = vpop.f32.mrf.mxu3  ;;  %4410 = vst [vmem:[#allocation20_spill] sm:$0xff] %v3953_v17  ;;  %v4048_v8 = vld [vmem:[%s4332_s7 + $0x110] sm:$0xff]  ;;  %v4096_v17 = vld [vmem:[%s4332_s7 + $0x100] sm:$0xff] }
 0x369   :  { %2137 = vmatmul.msk.bf16.vlgmr.msrb.gmra.mxu0 %vm1174_vm3, %v2136_v0  ;;  %2139 = vmatmul.msk.bf16.vlgmr.msrb.gmra.mxu2 %vm1174_vm3, %v2136_v0  ;;  %4411 = vst [vmem:[#allocation21_spill] sm:$0xff] %v3955_v63  ;;  %v4072_v40 = vld [vmem:[%s4332_s7 + $0x108] sm:$0xff]  ;;  %v4078_v52 = vld [vmem:[%s4332_s7 + $0x190] sm:$0xff]  ;;  %v4111_v63 = vld [vmem:[%s4332_s7] sm:$0xff] }
 0x36a   :  { %2140 = vmatmul.msk.bf16.vlgmr.msrb.gmra.mxu3 %vm1174_vm3, %v2136_v0  ;;  %2138 = vmatmul.msk.bf16.vlgmr.msrb.gmra.mxu1 %vm1174_vm3, %v2136_v0  ;;  %v4054_v0 = vld [vmem:[%s4332_s7 + $0x198] sm:$0xff] }
 0x36b   :  { %1854 = vmatpush.msra.mxu2 %v3878_v26  ;;  %1835 = vmatpush.msra.mxu1 %v3884_v15 }
 0x36c   :  { %1814 = vmatpush.msra.mxu0 %v3890_v12  ;;  %1874 = vmatpush.msra.mxu3 %v3902_v39 }
 0x36d   :  { %1855 = vmatpush.msra.mxu2 %v3896_v57  ;;  %1836 = vmatpush.msra.mxu1 %v3908_v44 }
 0x36e   :  { %1815 = vmatpush.msra.mxu0 %v3914_v50  ;;  %1875 = vmatpush.msra.mxu3 %v3926_v32 }
 0x36f   :  { %1856 = vmatpush.msra.mxu2 %v3920_v1  ;;  %1837 = vmatpush.msra.mxu1 %v3932_v11  ;;  %v1256_v61 = vpop.f32.mrf.mxu0  ;;  %v1269_v46 = vpop.f32.mrf.mxu1 }
 0x370   :  { %1816 = vmatpush.msra.mxu0 %v3938_v49  ;;  %1876 = vmatpush.msra.mxu3 %v3950_v56  ;;  %v4041_v62 = vpop.f32.mrf.mxu2  ;;  %v4043_v54 = vpop.f32.mrf.mxu3  ;;  %v4084_v61 = vld [vmem:[%s4332_s7 + $0x80] sm:$0xff]  ;;  %v4090_v46 = vld [vmem:[%s4332_s7 + $0x8] sm:$0xff] }
 0x371   :  { %1857 = vmatpush.msra.mxu2 %v3944_v2  ;;  %1838 = vmatpush.msra.mxu1 %v3960_v5  ;;  %4412 = vst [vmem:[#allocation18_spill] sm:$0xff] %v4041_v62  ;;  %v4104_v62 = vld [vmem:[%s4332_s7 + $0x188] sm:$0xff] }
 0x372   :  { %1817 = vmatpush.msra.mxu0 %v3966_v30  ;;  %1877 = vmatpush.msra.mxu3 %v3978_v59  ;;  %4413 = vst [vmem:[#allocation19_spill] sm:$0xff] %v4043_v54 }
 0x373   :  { %1858 = vmatpush.msra.mxu2 %v3972_v10  ;;  %1839 = vmatpush.msra.mxu1 %v3984_v27  ;;  %4414 = vst [vmem:[#allocation26_spill] sm:$0xff] %v4104_v62 }
 0x374   :  { %1818 = vmatpush.msra.mxu0 %v3990_v3  ;;  %1878 = vmatpush.msra.mxu3 %v4002_v33 }
 0x375   :  { %1859 = vmatpush.msra.mxu2 %v3996_v29  ;;  %1840 = vmatpush.msra.mxu1 %v4008_v58 }
 0x376   :  { %1819 = vmatpush.msra.mxu0 %v4014_v48  ;;  %1879 = vmatpush.msra.mxu3 %v4026_v42 }
 0x377   :  { %1860 = vmatpush.msra.mxu2 %v4020_v4  ;;  %1841 = vmatpush.msra.mxu1 %v4032_v53 }
 0x378   :  { %1820 = vmatpush.msra.mxu0 %v4038_v18  ;;  %1880 = vmatpush.msra.mxu3 %v4054_v0  ;;  %v1295_v54 = vpop.f32.mrf.mxu3 }
 0x379   :  { %1861 = vmatpush.msra.mxu2 %v4048_v8  ;;  %1842 = vmatpush.msra.mxu1 %v4060_v25 }
 0x37a   :  { %1821 = vmatpush.msra.mxu0 %v4066_v14  ;;  %1881 = vmatpush.msra.mxu3 %v4078_v52 }
 0x37b   :  { %1862 = vmatpush.msra.mxu2 %v4072_v40  ;;  %1843 = vmatpush.msra.mxu1 %v4084_v61 }
 0x37c   :  { %1822 = vmatpush.msra.mxu0 %v4090_v46  ;;  %1882 = vmatpush.msra.mxu3 %v4104_v62  ;;  %v1324_v62 = vpop.f32.mrf.mxu1 }
 0x37d   :  { %1863 = vmatpush.msra.mxu2 %v4096_v17  ;;  %1912 = vmatpush.msrb.mxu1 %v3717_v41  ;;  %v4118_v41 = vld [vmem:[%s4332_s7 + $0x180] sm:$0xff] }
 0x37e   :  { %1823 = vmatpush.msra.mxu0 %v4111_v63  ;;  %1883 = vmatpush.msra.mxu3 %v4118_v41 }
 0x37f   :  { %1932 = vmatpush.msrb.mxu2 %v3723_v43  ;;  %1913 = vmatpush.msrb.mxu1 %v3741_v22  ;;  %v1282_v43 = vpop.f32.mrf.mxu2  ;;  %v1311_v22 = vpop.f32.mrf.mxu0 }
 0x380   :  { %1892 = vmatpush.msrb.mxu0 %v3729_v36  ;;  %1952 = vmatpush.msrb.mxu3 %v3735_v21  ;;  %v1350_v21 = vpop.f32.mrf.mxu3 }
 0x381   :  { %1933 = vmatpush.msrb.mxu2 %v3747_v47  ;;  %1914 = vmatpush.msrb.mxu1 %v3765_v19 }
 0x382   :  { %1354 = vrot.lane.b32.xlu1 %v1311_v22, %s2317_s0  ;;  %1893 = vmatpush.msrb.mxu0 %v3753_v45 }
 0x383   :  { %1934 = vmatpush.msrb.mxu2 %v3771_v7  ;;  %1915 = vmatpush.msrb.mxu1 %v3790_v34 }
 0x384   :  { %1953 = vmatpush.msrb.mxu3 %v3759_v6  ;;  %1894 = vmatpush.msrb.mxu0 %v3777_v16  ;;  %v1326_v45 = vpop.f32.mrf.mxu1 }
 0x385   :  { %1935 = vmatpush.msrb.mxu2 %v3796_v55  ;;  %1916 = vmatpush.msrb.mxu1 %v3808_v38 }
 0x386   :  { %1954 = vmatpush.msrb.mxu3 %v3783_v35  ;;  %1895 = vmatpush.msrb.mxu0 %v3802_v31 }
 0x387   :  { %1936 = vmatpush.msrb.mxu2 %v3820_v28  ;;  %1917 = vmatpush.msrb.mxu1 %v3832_v51  ;;  %v1337_v36 = vpop.f32.mrf.mxu2  ;;  %v1313_v47 = vpop.f32.mrf.mxu0  ;;  %v4415_v28 = vld [vmem:[#allocation26_spill] sm:$0xff] }
 0x388   :  { %1955 = vmatpush.msrb.mxu3 %v3814_v9  ;;  %1360 = vrot.lane.b32.xlu2 %v1350_v21, %s2317_s0  ;;  %v1352_v19 = vpop.f32.mrf.mxu3 }
 0x389   :  { %1937 = vmatpush.msrb.mxu2 %v3844_v60  ;;  %1918 = vmatpush.msrb.mxu1 %v3859_v23 }
 0x38a   :  { %1356 = vrot.lane.b32.xlu1 %v1324_v62, %s2317_s0  ;;  %1896 = vmatpush.msrb.mxu0 %v3826_v20 }
 0x38b   :  { %1938 = vmatpush.msrb.mxu2 %v3878_v26  ;;  %1919 = vmatpush.msrb.mxu1 %v3884_v15 }
 0x38c   :  { %1956 = vmatpush.msrb.mxu3 %v3838_v13  ;;  %1897 = vmatpush.msrb.mxu0 %v3850_v37  ;;  %v1397_v16 = vpop.f32.mrf.mxu1 }
 0x38d   :  { %1939 = vmatpush.msrb.mxu2 %v3896_v57  ;;  %1920 = vmatpush.msrb.mxu1 %v3908_v44 }
 0x38e   :  { %1957 = vmatpush.msrb.mxu3 %v3865_v24  ;;  %1898 = vmatpush.msrb.mxu0 %v3890_v12 }
 0x38f   :  { %1940 = vmatpush.msrb.mxu2 %v3920_v1  ;;  %1921 = vmatpush.msrb.mxu1 %v3932_v11  ;;  %v1339_v6 = vpop.f32.mrf.mxu2  ;;  %v1384_v7 = vpop.f32.mrf.mxu0 }
 0x390   :  { %1958 = vmatpush.msrb.mxu3 %v3902_v39  ;;  %1899 = vmatpush.msrb.mxu0 %v3914_v50  ;;  %v1423_v34 = vpop.f32.mrf.mxu3 }
 0x391   :  { %1941 = vmatpush.msrb.mxu2 %v3944_v2  ;;  %1922 = vmatpush.msrb.mxu1 %v3960_v5 }
 0x392   :  { %1358 = vrot.lane.b32.xlu1 %v1337_v36, %s2317_s0  ;;  %1959 = vmatpush.msrb.mxu3 %v3926_v32 }
 0x393   :  { %1942 = vmatpush.msrb.mxu2 %v3972_v10  ;;  %1923 = vmatpush.msrb.mxu1 %v3984_v27  ;;  %v4416_v10 = vld [vmem:[#allocation5_spill] sm:$0xff] }
 0x394   :  { %1427 = vrot.lane.b32.xlu2 %v1384_v7, %s2318_s18  ;;  %1900 = vmatpush.msrb.mxu0 %v3938_v49  ;;  %v1399_v31 = vpop.f32.mrf.mxu1  ;;  %vm4423_vm2 = vcmp.lt.s32.totalorder %v4416_v10, 95 }
 0x395   :  { %1943 = vmatpush.msrb.mxu2 %v3996_v29  ;;  %1924 = vmatpush.msrb.mxu1 %v4008_v58  ;;  %vm4424_vm13 = vmmov %vm4423_vm2 }
 0x396   :  { %1960 = vmatpush.msrb.mxu3 %v3950_v56  ;;  %1901 = vmatpush.msrb.mxu0 %v3966_v30  ;;  %vm4429_vm15 = vmmov %vm4423_vm2 }
 0x397   :  { %1944 = vmatpush.msrb.mxu2 %v4020_v4  ;;  %1925 = vmatpush.msrb.mxu1 %v4032_v53  ;;  %v1410_v35 = vpop.f32.mrf.mxu2  ;;  %v1386_v55 = vpop.f32.mrf.mxu0  ;;  %vm4430_vm9 = vmmov %vm4423_vm2 }
 0x398   :  { %1961 = vmatpush.msrb.mxu3 %v3978_v59  ;;  %1902 = vmatpush.msrb.mxu0 %v3990_v3  ;;  %v1425_v9 = vpop.f32.mrf.mxu3 }
 0x399   :  { %1945 = vmatpush.msrb.mxu2 %v4048_v8  ;;  %1926 = vmatpush.msrb.mxu1 %v4060_v25 }
 0x39a   :  { %1962 = vmatpush.msrb.mxu3 %v4002_v33  ;;  %1903 = vmatpush.msrb.mxu0 %v4014_v48 }
 0x39b   :  { %1946 = vmatpush.msrb.mxu2 %v4072_v40  ;;  %1433 = vrot.lane.b32.xlu0 %v1423_v34, %s2318_s18 }
 0x39c   :  { %1927 = vmatpush.msrb.mxu1 %v4084_v61  ;;  %1429 = vrot.lane.b32.xlu2 %v1397_v16, %s2318_s18  ;;  %v1470_v51 = vpop.f32.mrf.mxu1  ;;  %v4417_v61 = vld [vmem:[#allocation19_spill] sm:$0xff] }
 0x39d   :  { %1947 = vmatpush.msrb.mxu2 %v4096_v17  ;;  %1963 = vmatpush.msrb.mxu3 %v4026_v42 }
 0x39e   :  { %1904 = vmatpush.msrb.mxu0 %v4038_v18 }
 0x39f   :  { %1964 = vmatpush.msrb.mxu3 %v4054_v0  ;;  %v1412_v38 = vpop.f32.mrf.mxu2  ;;  %v1457_v20 = vpop.f32.mrf.mxu0 }
 0x3a0   :  { %1905 = vmatpush.msrb.mxu0 %v4066_v14  ;;  %v1496_v60 = vpop.f32.mrf.mxu3 }
 0x3a1   :  { %1965 = vmatpush.msrb.mxu3 %v4078_v52  ;;  %1506 = vrot.lane.b32.xlu1 %v1496_v60, %s2315_s16 }
 0x3a2   :  { %1906 = vmatpush.msrb.mxu0 %v4090_v46 }
 0x3a3   :  { %1966 = vmatpush.msrb.mxu3 %v4415_v28  ;;  %1500 = vrot.lane.b32.xlu0 %v1457_v20, %s2315_s16 }
 0x3a4   :  { %1907 = vmatpush.msrb.mxu0 %v4111_v63  ;;  %1431 = vrot.lane.b32.xlu2 %v1410_v35, %s2318_s18  ;;  %v1472_v23 = vpop.f32.mrf.mxu1  ;;  %s2056_s18 = sshll.u32 %s4333_s8, 4  ;;  %s2057_s18 = int_to_ptr.hbm [resolvable:$true] %s2056_s18 }
 0x3a5   :  { %1967 = vmatpush.msrb.mxu3 %v4118_v41 }
 0x3a7   :  { %v1483_v13 = vpop.f32.mrf.mxu2  ;;  %v1459_v37 = vpop.f32.mrf.mxu0 }
 0x3a8   :  { %v1498_v26 = vpop.f32.mrf.mxu3 }
 0x3ab   :  { %1502 = vrot.lane.b32.xlu0 %v1470_v51, %s2315_s16 }
 0x3ac   :  { %v1543_v12 = vpop.f32.mrf.mxu1 }
 0x3af   :  { %v1485_v24 = vpop.f32.mrf.mxu2  ;;  %v1530_v15 = vpop.f32.mrf.mxu0 }
 0x3b0   :  { %1573 = vrot.lane.b32.xlu1 %v1530_v15, %s2316_s17  ;;  %v1569_v39 = vpop.f32.mrf.mxu3  ;;  %v4418_v15 = vld [vmem:[#allocation21_spill] sm:$0xff] }
 0x3b1   :  { %1579 = vrot.lane.b32.xlu2 %v1569_v39, %s2316_s17 }
 0x3b3   :  { %1504 = vrot.lane.b32.xlu0 %v1483_v13, %s2315_s16 }
 0x3b4   :  { %v1545_v50 = vpop.f32.mrf.mxu1 }
 0x3b7   :  { %v1556_v57 = vpop.f32.mrf.mxu2  ;;  %v1532_v44 = vpop.f32.mrf.mxu0 }
 0x3b8   :  { %1575 = vrot.lane.b32.xlu1 %v1543_v12, %s2316_s17  ;;  %v1571_v32 = vpop.f32.mrf.mxu3 }
 0x3b9   :  { %v4419_v32 = vld [vmem:[#allocation18_spill] sm:$0xff] }
 0x3bc   :  { %v1616_v49 = vpop.f32.mrf.mxu1 }
 0x3bf   :  { %v1558_v1 = vpop.f32.mrf.mxu2  ;;  %v1603_v11 = vpop.f32.mrf.mxu0 }
 0x3c0   :  { %1577 = vrot.lane.b32.xlu1 %v1556_v57, %s2316_s17  ;;  %1646 = vrot.lane.b32.xlu2 %v1603_v11, %s2314_s15  ;;  %v1642_v56 = vpop.f32.mrf.mxu3 }
 0x3c1   :  { %1652 = vrot.lane.b32.xlu0 %v1642_v56, %s2314_s15 }
 0x3c2   :  { %v1237_v5 = vpop.permute.xlu2 %1236 }
 0x3c4   :  { %v1618_v63 = vpop.f32.mrf.mxu1 }
 0x3c7   :  { %v1629_v2 = vpop.f32.mrf.mxu2  ;;  %v1605_v17 = vpop.f32.mrf.mxu0 }
 0x3c8   :  { %1648 = vrot.lane.b32.xlu2 %v1616_v49, %s2314_s15  ;;  %v1644_v3 = vpop.f32.mrf.mxu3 }
 0x3cb   :  { %v4200_v30 = vpop.permute.xlu0 %1230 }
 0x3cc   :  { %v1241_v59 = vsel %vm109_vm8, %v1237_v5, %v4200_v30  ;;  %v1689_v33 = vpop.f32.mrf.mxu1 }
 0x3cd   :  { %v1294_v46 = vadd.f32 %v4417_v61, %v1241_v59 }
 0x3cf   :  { %v1631_v27 = vpop.f32.mrf.mxu2  ;;  %v1676_v29 = vpop.f32.mrf.mxu0 }
 0x3d0   :  { %1719 = vrot.lane.b32.xlu0 %v1676_v29, %s2313_s12  ;;  %1650 = vrot.lane.b32.xlu2 %v1629_v2, %s2314_s15  ;;  %v4420_v29 = vld [vmem:[#allocation20_spill] sm:$0xff] }
 0x3d1   :  { %v1715_v48 = vpop.f32.mrf.mxu3 }
 0x3d2   :  { %1725 = vrot.lane.b32.xlu1 %v1715_v48, %s2313_s12 }
 0x3d4   :  { %v1691_v42 = vpop.f32.mrf.mxu1 }
 0x3d7   :  { %v1702_v58 = vpop.f32.mrf.mxu2  ;;  %v1678_v4 = vpop.f32.mrf.mxu0 }
 0x3d8   :  { %1723 = vrot.lane.b32.xlu0 %v1702_v58, %s2313_s12 }
 0x3d9   :  { %v1717_v18 = vpop.f32.mrf.mxu3  ;;  %v1235_v8 = vpop.permute.xlu1 %1234 }
 0x3da   :  { %v1233_v45 = vpop.permute.xlu0 %1232  ;;  %v1238_v39 = vsel %vm109_vm8, %v1235_v8, %v1237_v5 }
 0x3db   :  { %v1239_v24 = vsel %vm109_vm8, %v1233_v45, %v1235_v8  ;;  %v1281_v11 = vadd.f32 %v4419_v32, %v1238_v39  ;;  %v1240_v2 = vsel %vm109_vm8, %v4200_v30, %v1233_v45 }
 0x3dc   :  { %v1268_v12 = vadd.f32 %v4418_v15, %v1239_v24 }
 0x3df   :  { %v1704_v53 = vpop.f32.mrf.mxu2 }
 0x3e0   :  { %1721 = vrot.lane.b32.xlu0 %v1689_v33, %s2313_s12  ;;  %v1255_v33 = vadd.f32 %v4420_v29, %v1240_v2  ;;  %s2321_s12 = smov 1  }
 0x3e2   :  { %v1361_v52 = vpop.permute.xlu2 %1360 }
 0x3e6   :  { %v1749_v62 = vpop.f32.mrf.mxu0 }
 0x3e7   :  { %v1762_v54 = vpop.f32.mrf.mxu1 }
 0x3ec   :  { %v1775_v0 = vpop.f32.mrf.mxu2 }
 0x3ed   :  { %v1788_v25 = vpop.f32.mrf.mxu3  ;;  %1796 = vrot.lane.b32.xlu1 %v1775_v0, %s2312_s11 }
 0x3ee   :  { %1798 = vrot.lane.b32.xlu2 %v1788_v25, %s2312_s11  ;;  %v1751_v14 = vpop.f32.mrf.mxu0  ;;  %v1428_v47 = vpop.permute.xlu2 %1427 }
 0x3ef   :  { %v1764_v40 = vpop.f32.mrf.mxu1 }
 0x3f4   :  { %v1355_v41 = vpop.permute.xlu1 %1354  ;;  %v1777_v43 = vpop.f32.mrf.mxu2 }
 0x3f5   :  { %1792 = vrot.lane.b32.xlu1 %v1749_v62, %s2312_s11  ;;  %v1365_v22 = vsel %vm122_vm6, %v1361_v52, %v1355_v41  ;;  %v1790_v36 = vpop.f32.mrf.mxu3 }
 0x3f6   :  { %1794 = vrot.lane.b32.xlu2 %v1762_v54, %s2312_s11  ;;  %v4217_v21 = vadd.f32 %v1365_v22, %v1294_v46  ;;  %v1430_v6 = vpop.permute.xlu2 %1429 }
 0x3f7   :  { %v1437_v0 = vsel %vm135_vm7, %v1428_v47, %v1430_v6 }
 0x3fc   :  { %v1357_v7 = vpop.permute.xlu1 %1356 }
 0x3fd   :  { %v1364_v27 = vsel %vm122_vm6, %v1355_v41, %v1357_v7 }
 0x3fe   :  { %v1432_v35 = vpop.permute.xlu2 %1431  ;;  %v1366_v53 = vadd.f32 %v1364_v27, %v1255_v33 }
 0x3ff   :  { %v1436_v56 = vsel %vm135_vm7, %v1430_v6, %v1432_v35 }
 0x400   :  { %v1439_v41 = vadd.f32 %v1437_v0, %v1366_v53 }
 0x404   :  { %v1359_v34 = vpop.permute.xlu1 %1358 }
 0x405   :  { %v1363_v26 = vsel %vm122_vm6, %v1357_v7, %v1359_v34  ;;  %v1362_v1 = vsel %vm122_vm6, %v1359_v34, %v1361_v52  ;;  %vm4421_vm6 = vcmp.lt.s32.totalorder %v4416_v10, 96 }
 0x406   :  { %v1367_v50 = vadd.f32 %v1363_v26, %v1268_v12  ;;  %v1368_v5 = vadd.f32 %v1362_v1, %v1281_v11  ;;  %vm4422_vm8 = vmmov %vm4421_vm6 }
 0x408   :  { %v1440_v59 = vadd.f32 %v1436_v56, %v1367_v50 }
 0x40b   :  { %v1580_v55 = vpop.permute.xlu2 %1579 }
 0x40d   :  { %v1434_v19 = vpop.permute.xlu0 %1433 }
 0x40e   :  { %v1435_v17 = vsel %vm135_vm7, %v1432_v35, %v1434_v19  ;;  %v1438_v25 = vsel %vm135_vm7, %v1434_v19, %v1428_v47  ;;  %vm4425_vm7 = vcmp.lt.s32.totalorder %v4416_v10, 94 }
 0x40f   :  { %v1441_v58 = vadd.f32 %v1435_v17, %v1368_v5  ;;  %v1442_v6 = vadd.f32 %v1438_v25, %v4217_v21  ;;  %vm4426_vm14 = vmmov %vm4425_vm7 }
 0x410   :  { %vm4431_vm10 = vmmov %vm4425_vm7 }
 0x411   :  { %vm4432_vm11 = vmmov %vm4425_vm7 }
 0x413   :  { %v1507_v38 = vpop.permute.xlu1 %1506 }
 0x415   :  { %v1501_v16 = vpop.permute.xlu0 %1500 }
 0x416   :  { %v1511_v47 = vsel %vm148_vm5, %v1507_v38, %v1501_v16 }
 0x417   :  { %v1515_v24 = vadd.f32 %v1511_v47, %v1442_v6 }
 0x41a   :  { %v4219_v9 = vpop.permute.xlu2 %1646 }
 0x41d   :  { %v1503_v31 = vpop.permute.xlu0 %1502 }
 0x41e   :  { %v1510_v40 = vsel %vm148_vm5, %v1501_v16, %v1503_v31 }
 0x41f   :  { %v1512_v19 = vadd.f32 %v1510_v40, %v1439_v41 }
 0x422   :  { %v1574_v20 = vpop.permute.xlu1 %1573  ;;  %v4221_v13 = vpop.permute.xlu2 %1648 }
 0x425   :  { %v1505_v28 = vpop.permute.xlu0 %1504 }
 0x426   :  { %v1509_v63 = vsel %vm148_vm5, %v1503_v31, %v1505_v28  ;;  %v1508_v3 = vsel %vm148_vm5, %v1505_v28, %v1507_v38  ;;  %v1584_v31 = vsel %vm161_vm4, %v1580_v55, %v1574_v20  ;;  %vm4427_vm5 = vmmov %vm4421_vm6 }
 0x427   :  { %v1513_v48 = vadd.f32 %v1509_v63, %v1440_v59  ;;  %v1514_v18 = vadd.f32 %v1508_v3, %v1441_v58  ;;  %v1588_v26 = vadd.f32 %v1584_v31, %v1515_v24 }
 0x42a   :  { %v1576_v60 = vpop.permute.xlu1 %1575  ;;  %v1651_v23 = vpop.permute.xlu2 %1650 }
 0x42b   :  { %v1655_v52 = vsel %vm4422_vm8, %v4221_v13, %v1651_v23  ;;  %v1583_v45 = vsel %vm161_vm4, %v1574_v20, %v1576_v60 }
 0x42c   :  { %v1585_v16 = vadd.f32 %v1583_v45, %v1512_v19 }
 0x432   :  { %v1578_v57 = vpop.permute.xlu1 %1577 }
 0x433   :  { %v1653_v51 = vpop.permute.xlu0 %1652  ;;  %v1582_v30 = vsel %vm161_vm4, %v1576_v60, %v1578_v57  ;;  %v1581_v42 = vsel %vm161_vm4, %v1578_v57, %v1580_v55  ;;  %vm4428_vm4 = vmmov %vm4427_vm5 }
 0x434   :  { %v1586_v62 = vadd.f32 %v1582_v30, %v1513_v48  ;;  %v1654_v8 = vsel %vm4421_vm6, %v1651_v23, %v1653_v51  ;;  %v1587_v14 = vadd.f32 %v1581_v42, %v1514_v18  ;;  %v1657_v21 = vsel %vm4427_vm5, %v1653_v51, %v4219_v9 }
 0x435   :  { %v1656_v55 = vsel %vm4428_vm4, %v4219_v9, %v4221_v13  ;;  %v1661_v51 = vadd.f32 %v1657_v21, %v1588_v26  ;;  %v4433_v21 = vld [vmem:[#allocation9_spill] sm:$0xff] }
 0x436   :  { %v1659_v43 = vadd.f32 %v1655_v52, %v1586_v62  ;;  %v1660_v22 = vadd.f32 %v1654_v8, %v1587_v14  ;;  %v1658_v12 = vadd.f32 %v1656_v55, %v1585_v16  ;;  %v4434_v55 = vld [vmem:[#allocation8_spill] sm:$0xff] }
 0x442   :  { %v4223_v37 = vpop.permute.xlu0 %1719 }
 0x444   :  { %v1726_v4 = vpop.permute.xlu1 %1725 }
 0x445   :  { %v1730_v20 = vsel %vm4429_vm15, %v1726_v4, %v4223_v37 }
 0x446   :  { %v1734_v57 = vadd.f32 %v1730_v20, %v1661_v51  ;;  %v4436_v51 = vld [vmem:[#allocation7_spill] sm:$0xff] }
 0x448   :  { %v1799_v49 = vpop.permute.xlu2 %1798 }
 0x44a   :  { %v1724_v44 = vpop.permute.xlu0 %1723 }
 0x44b   :  { %v1727_v61 = vsel %vm4423_vm2, %v1724_v44, %v1726_v4 }
 0x44c   :  { %v1733_v7 = vadd.f32 %v1727_v61, %v1660_v22  ;;  %v1976_v61 = vld [vmem:[%s4330_s5] sm:$0xf]  ;;  %s2322_s5 = smov [#allocation2]  }
 0x450   :  { %v1795_v36 = vpop.permute.xlu2 %1794 }
 0x452   :  { %v1722_v54 = vpop.permute.xlu0 %1721 }
 0x453   :  { %v1728_v46 = vsel %vm4424_vm13, %v1722_v54, %v1724_v44  ;;  %v1729_v15 = vsel %vm4430_vm9, %v4223_v37, %v1722_v54  ;;  %vm4437_vm13 = vcmask 1043456  }
 0x454   :  { %v1732_v35 = vadd.f32 %v1728_v46, %v1659_v43  ;;  %v1731_v39 = vadd.f32 %v1729_v15, %v1658_v12  ;;  %v4435_v15 = vld [vmem:[#allocation6_spill] sm:$0xff] }
 0x45f   :  { %v1797_v34 = vpop.permute.xlu1 %1796 }
 0x460   :  { %v1800_v28 = vsel %vm4425_vm7, %v1797_v34, %v1799_v49  ;;  %v1801_v23 = vsel %vm4426_vm14, %v1795_v36, %v1797_v34  ;;  %vm4438_vm7 = vmmov %vm4437_vm13 }
 0x461   :  { %v4279_v38 = vadd.f32 %v1800_v28, %v1733_v7  ;;  %v4281_v60 = vadd.f32 %v1801_v23, %v1732_v35 }
 0x463   :  { %1844 = vmatmul.f32.vlgmr.msra.gmra.mxu1 %v4281_v60  ;;  %1864 = vmatmul.f32.vlgmr.msra.gmra.mxu2 %v4279_v38  ;;  %v1890_v32 = vmul.f32 %v4279_v38, %v4279_v38  ;;  %v1889_v11 = vmul.f32 %v4281_v60, %v4281_v60 }
 0x467   :  { %v1793_v44 = vpop.permute.xlu1 %1792 }
 0x468   :  { %v1802_v50 = vsel %vm4431_vm10, %v1793_v44, %v1795_v36  ;;  %v1803_v1 = vsel %vm4432_vm11, %v1799_v49, %v1793_v44  ;;  %v1993_v36 = vld [vmem:[%s4331_s6] sm:$0xf]  ;;  %s2054_s6 = sshll.u32 %s2322_s5, 4  ;;  %s2055_s6 = int_to_ptr.vmem [resolvable:$true] %s2054_s6 }
 0x469   :  { %v1804_v9 = vadd.f32 %v1802_v50, %v1731_v39  ;;  %v1807_v13 = vadd.f32 %v1803_v1, %v1734_v57 }
 0x46b   :  { %1824 = vmatmul.f32.vlgmr.msra.gmra.mxu0 %v1804_v9  ;;  %1884 = vmatmul.f32.vlgmr.msra.gmra.mxu3 %v1807_v13  ;;  %v1888_v37 = vmul.f32 %v1804_v9, %v1804_v9  ;;  %v1891_v2 = vmul.f32 %v1807_v13, %v1807_v13 }
 0x46c   :  { %1928 = vmatmul.f32.vlgmr.msrb.gmra.mxu1 %v1889_v11  ;;  %1948 = vmatmul.f32.vlgmr.msrb.gmra.mxu2 %v1890_v32 }
 0x473   :  { %1908 = vmatmul.f32.vlgmr.msrb.gmra.mxu0 %v1888_v37  ;;  %1968 = vmatmul.f32.vlgmr.msrb.gmra.mxu3 %v1891_v2 }
 0x4e0   :  { %v1845_v56 = vpop.f32.mrf.mxu1 }
 0x4e6   :  { %v1865_v10 = vpop.f32.mrf.mxu2 }
 0x4e8   :  { %v1825_v17 = vpop.f32.mrf.mxu0 }
 0x4e9   :  { %v1846_v49 = vadd.f32 %v1845_v56, %v1825_v17  ;;  %v1929_v59 = vpop.f32.mrf.mxu1 }
 0x4eb   :  { %v1866_v5 = vadd.f32 %v1865_v10, %v1846_v49 }
 0x4ee   :  { %v1885_v63 = vpop.f32.mrf.mxu3 }
 0x4ef   :  { %v1886_v3 = vadd.f32 %v1885_v63, %v1866_v5  ;;  %v1949_v29 = vpop.f32.mrf.mxu2 }
 0x4f0   :  { %v1909_v27 = vpop.f32.mrf.mxu0 }
 0x4f1   :  { %v1930_v30 = vadd.f32 %v1929_v59, %v1909_v27  ;;  %v1972_v33 = vmul.f32 0.0034722222, %v1886_v3 }
 0x4f3   :  { %v1950_v58 = vadd.f32 %v1949_v29, %v1930_v30  ;;  %v1974_v42 = vmul.f32 %v1972_v33, %v1972_v33 }
 0x4f6   :  { %v1969_v48 = vpop.f32.mrf.mxu3 }
 0x4f7   :  { %v1970_v4 = vadd.f32 %v1969_v48, %v1950_v58 }
 0x4f9   :  { %v1973_v53 = vmul.f32 0.0034722222, %v1970_v4 }
 0x4fb   :  { %v1975_v18 = vsub.f32 %v1973_v53, %v1974_v42 }
 0x4fd   :  { %v1977_v62 = vadd.f32 1e-05, %v1975_v18 }
 0x4ff   :  { %2220 = vrsqrt.f32 %v1977_v62  ;;  %vm1984_vm1 = vweird.f32 %v1977_v62 }
 0x505   :  { %v2221_v54 = vpop.eup %2220 }
 0x506   :  { %v1979_v8 = vmul.f32 %v2221_v54, %v1977_v62  ;;  %vm1985_vm12 = vweird.f32 %v2221_v54 }
 0x507   :  { %vm1986_vm0 = vmor %vm1984_vm1, %vm1985_vm12 }
 0x508   :  { %v1980_v0 = vmul.f32 %v2221_v54, %v1979_v8 }
 0x50a   :  { %v1981_v25 = vmul.f32 0.5, %v1980_v0 }
 0x50c   :  { %v1982_v14 = vsub.f32 1.5, %v1981_v25 }
 0x50e   :  { %v1983_v40 = vmul.f32 %v2221_v54, %v1982_v14 }
 0x510   :  { %v1987_v52 = vsel %vm1986_vm0, %v2221_v54, %v1983_v40 }
 0x511   :  { %1989 = vrot.lane.b32.xlu0 %v1987_v52, %s2319_s19 }
 0x583   :  { %v1990_v46 = vpop.permute.xlu0 %1989 }
 0x584   :  { %v1992_v41 = vmul.f32 %v1990_v46, %v1976_v61 }
 0x586   :  { %2005 = vperm.xlu0 %2202, %v1992_v41   ;;  %1995 = vrot.lane.b32.xlu1 %v1992_v41, %s2321_s12 }
 0x5f8   :  { %v1996_v43 = vpop.permute.xlu1 %1995  ;;  %v2006_v6 = vpop.permute.xlu0 %2005 }
 0x5f9   :  { %v1998_v22 = vmul.f32 %v1996_v43, %v1972_v33  ;;  %v2008_v19 = vmul.f32 %v2006_v6, %v1804_v9  ;;  %v2009_v7 = vmul.f32 %v2006_v6, %v4281_v60  ;;  %v2010_v35 = vmul.f32 %v2006_v6, %v4279_v38 }
 0x5fa   :  { %v2011_v34 = vmul.f32 %v2006_v6, %v1807_v13 }
 0x5fb   :  { %2000 = vrot.lane.b32.xlu2 %v1998_v22, %s2319_s19 }
 0x655   :  { %v2001_v47 = vpop.permute.xlu2 %2000 }
 0x656   :  { %v2003_v45 = vsub.f32 %v1993_v36, %v2001_v47 }
 0x658   :  { %2014 = vperm.xlu1 %2203, %v2003_v45  }
 0x6ca   :  { %v2015_v31 = vpop.permute.xlu1 %2014 }
 0x6cb   :  { %v2017_v28 = vadd.f32 %v2015_v31, %v2008_v19  ;;  %v2018_v23 = vadd.f32 %v2015_v31, %v2009_v7  ;;  %v2019_v24 = vadd.f32 %v2015_v31, %v2010_v35  ;;  %v2020_v16 = vadd.f32 %v2015_v31, %v2011_v34 }
 0x6cd   :  { %v2021_v26 = vadd.f32 %v2017_v28, %v4433_v21  ;;  %v2022_v20 = vadd.f32 %v2018_v23, %v4434_v55  ;;  %v2023_v12 = vadd.f32 %v2019_v24, %v4435_v15  ;;  %v2024_v57 = vadd.f32 %v2020_v16, %v4436_v51 }
 0x6cf   :  { %vm2026_vm3 = vcmp.gt.f32.partialorder %v2022_v20, 0.0  ;;  %vm2028_vm6 = vcmp.gt.f32.partialorder %v2024_v57, 0.0  ;;  %v2029_v39 = vmul.f32 0.05, %v2021_v26  ;;  %v2030_v60 = vmul.f32 0.05, %v2022_v20 }
 0x6d0   :  { %vm2025_vm8 = vcmp.gt.f32.partialorder %v2021_v26, 0.0  ;;  %v2031_v38 = vmul.f32 0.05, %v2023_v12  ;;  %v2032_v44 = vmul.f32 0.05, %v2024_v57  ;;  %vm2027_vm2 = vcmp.gt.f32.partialorder %v2023_v12, 0.0 }
 0x6d1   :  { %v2034_v50 = vsel %vm2026_vm3, %v2022_v20, %v2030_v60  ;;  %v2033_v32 = vsel %vm2025_vm8, %v2021_v26, %v2029_v39 }
 0x6d2   :  { %v2036_v1 = vsel %vm2028_vm6, %v2024_v57, %v2032_v44  ;;  %v2041_v9 = vrot.slane %v2034_v50, 4  ;;  %v2035_v11 = vsel %vm2027_vm2, %v2023_v12, %v2031_v38 }
 0x6d3   :  { %v2042_v13 = vrot.slane %v2036_v1, 4 }
 0x6d4   :  { %v2043_v37 = vsel %vm4437_vm13, %v2033_v32, %v2041_v9 }
 0x6d5   :  { %v2044_v2 = vsel %vm4438_vm7, %v2035_v11, %v2042_v13  ;;  %2047 = vst [vmem:[#allocation2] sm:$0xff] %v2043_v37 }
 0x6d6   :  { %2048 = vst [vmem:[#allocation2 + $0x8] sm:$0xff] %v2044_v2 }
 0x6d7   :  { %2059 = dma.vmem_to_hbm [thread:$0]  %s2055_s6, 256, %s2057_s18, [#allocation3]  }
 0x6d8   :  { %2310 = dma.done.wait [#allocation3], 256  }
 0x6d9   :  { %2311 = vsyncadd [#allocation3], 4294967040 }
 0x6da   :  { %2064 = vsyncpa [#allocation3], 1 }

</bundles_post_ra>
